<compile_context>
chip_gen: v5e
topology: v5e:2x2
jax: 0.10.0
libtpu: 0.0.40
codegen_flags: <defaults>
</compile_context>

<pallas_src>
import jax
import jax.numpy as jnp
from jax import lax
from jax.experimental import pallas as pl
from jax.experimental.pallas import tpu as pltpu

INPUT_DIM = 63
H1, H2, H3 = 256, 512, 256
LATENT = 5
BN_EPS = 1e-5

PAD_IN = 64                    # INPUT_DIM (63) padded to a lane-friendly 64
PAD_HEAD = 64                  # fused [mu | logvar] (10) padded to 64
OUT_SLAB = PAD_IN + PAD_HEAD   # single 128-lane output slab


def _linear_bf16(h, w_ref, b_ref):
    # bf16 MXU operands, f32 accumulation; bias add in f32.
    return jnp.dot(h.astype(jnp.bfloat16), w_ref[...],
                   preferred_element_type=jnp.float32) + b_ref[...]


def _linear_f32(h, w_ref, b_ref):
    return jnp.dot(h, w_ref[...], preferred_element_type=jnp.float32) + b_ref[...]


def _batchnorm_train(h, g_ref, be_ref):
    # PyTorch BatchNorm1d training mode: per-feature batch mean / biased var.
    # One-traversal stats: var = E[h^2] - mean^2 (clamped >= 0 for fp safety).
    mean = jnp.mean(h, axis=0, keepdims=True)
    msq = jnp.mean(h * h, axis=0, keepdims=True)
    var = jnp.maximum(msq - mean * mean, 0.0)
    return (h - mean) * lax.rsqrt(var + BN_EPS) * g_ref[...] + be_ref[...]


def vae_kernel(
    x_ref, eps_ref,
    w1, b1, g1, be1,
    w2, b2, g2, be2,
    w3, b3, g3, be3,
    wmulv, bmulv,
    w5, b5, w6, b6, w7, b7, w8, b8,
    out_ref,
):
    x = x_ref[...]                                   # [B, 64] (zero-padded)

    # ---------------- encoder ----------------
    h = jnp.maximum(_batchnorm_train(_linear_bf16(x, w1, b1), g1, be1), 0.0)
    h = jnp.maximum(_batchnorm_train(_linear_bf16(h, w2, b2), g2, be2), 0.0)
    h = jnp.maximum(_batchnorm_train(_linear_bf16(h, w3, b3), g3, be3), 0.0)

    # fused mu|logvar head, lane-padded: [:,0:5]=mu, [:,5:10]=logvar, rest 0
    mulv = _linear_bf16(h, wmulv, bmulv)             # [B, 64] f32

    mu = mulv[:, :LATENT]                            # [B, 5]
    logvar = mulv[:, LATENT:2 * LATENT]              # [B, 5]

    # ---------------- reparameterize ----------------
    std = jnp.minimum(jnp.exp(0.5 * logvar), 1.0)    # torch.clamp(std, max=1.0)
    z = mu + eps_ref[...] * std                      # [B, 5]

    # ---------------- decoder ----------------
    d = jnp.maximum(_linear_f32(z, w5, b5), 0.0)     # tiny K=5 matmul kept f32
    d = jnp.maximum(_linear_bf16(d, w6, b6), 0.0)
    d = jnp.maximum(_linear_bf16(d, w7, b7), 0.0)
    recon = jax.nn.sigmoid(_linear_bf16(d, w8, b8))  # [B, 64] (lane 63 = pad)

    # single lane-dense [B, 128] full-tile store: [recon_pad | mu/logvar_pad]
    out_ref[...] = jnp.concatenate([recon, mulv], axis=1)


@jax.jit
def vae_forward(x, eps, params):
    """x: [B, 63] f32, eps: [B, 5] f32 (the randn_like draw)."""
    B = x.shape[0]
    x_pad = jnp.pad(x, ((0, 0), (0, PAD_IN - INPUT_DIM)))
    vmem = pl.BlockSpec(memory_space=pltpu.MemorySpace.VMEM)
    n_in = 2 + len(params)

    flops = 2 * B * (
        PAD_IN * H1 + H1 * H2 + H2 * H3 + H3 * PAD_HEAD      # encoder + head
        + LATENT * H3 + H3 * H2 + H2 * H1 + H1 * PAD_IN       # decoder
    )
    param_bytes = sum(int(p.size) * p.dtype.itemsize for p in params)
    bytes_accessed = (param_bytes
                      + B * PAD_IN * 4 + B * LATENT * 4       # x_pad, eps
                      + B * OUT_SLAB * 4)                     # output slab
    transcendentals = B * (LATENT + PAD_IN) + (H1 + H2 + H3)  # exp, sigmoid, rsqrt
    cost = pl.CostEstimate(flops=flops, transcendentals=transcendentals,
                           bytes_accessed=bytes_accessed)

    slab = pl.pallas_call(
        vae_kernel,
        out_shape=jax.ShapeDtypeStruct((B, OUT_SLAB), jnp.float32),
        in_specs=[vmem] * n_in,
        out_specs=vmem,
        cost_estimate=cost,
    )(x_pad, eps, *params)

    recon = slab[:, :INPUT_DIM]
    mu = slab[:, PAD_IN:PAD_IN + LATENT]
    logvar = slab[:, PAD_IN + LATENT:PAD_IN + 2 * LATENT]
    return recon, mu, logvar


def init_params(key):
    """Parameters in kernel layout: linear weights as [in, out] (transposed vs
    nn.Linear), big-matmul weights in bf16, biases / BN params f32 as [1, dim].
    fc1 rows padded to 64, fc8 cols padded to 64, mu/logvar fused+padded to 64.
    """
    def linear(k, fin, fout):
        kw, kb = jax.random.split(k)
        bound = 1.0 / float(fin) ** 0.5
        w = jax.random.uniform(kw, (fin, fout), jnp.float32, -bound, bound)
        b = jax.random.uniform(kb, (1, fout), jnp.float32, -bound, bound)
        return w, b

    ks = jax.random.split(key, 9)
    w1, b1 = linear(ks[0], INPUT_DIM, H1)
    w2, b2 = linear(ks[1], H1, H2)
    w3, b3 = linear(ks[2], H2, H3)
    wmu, bmu = linear(ks[3], H3, LATENT)
    wlv, blv = linear(ks[4], H3, LATENT)
    w5, b5 = linear(ks[5], LATENT, H3)
    w6, b6 = linear(ks[6], H3, H2)
    w7, b7 = linear(ks[7], H2, H1)
    w8, b8 = linear(ks[8], H1, INPUT_DIM)

    pad_cols = lambda a, to: jnp.pad(a, ((0, 0), (0, to - a.shape[1])))
    pad_rows = lambda a, to: jnp.pad(a, ((0, to - a.shape[0]), (0, 0)))
    bf16 = lambda a: a.astype(jnp.bfloat16)

    w1p = bf16(pad_rows(w1, PAD_IN))                                       # [64, 256]
    wmulv = bf16(pad_cols(jnp.concatenate([wmu, wlv], axis=1), PAD_HEAD))  # [256, 64]
    bmulv = pad_cols(jnp.concatenate([bmu, blv], axis=1), PAD_HEAD)        # [1, 64]
    w8p = bf16(pad_cols(w8, PAD_IN))                                       # [256, 64]
    b8p = pad_cols(b8, PAD_IN)                                             # [1, 64]

    def bn(dim):  # gamma=1, beta=0 (PyTorch default init)
        return jnp.ones((1, dim), jnp.float32), jnp.zeros((1, dim), jnp.float32)

    g1, be1 = bn(H1)
    g2, be2 = bn(H2)
    g3, be3 = bn(H3)

    return (
        w1p, b1, g1, be1,
        bf16(w2), b2, g2, be2,
        bf16(w3), b3, g3, be3,
        wmulv, bmulv,
        w5, b5,                # f32: tiny K=5 decoder-entry matmul
        bf16(w6), b6,
        bf16(w7), b7,
        w8p, b8p,
    )


if __name__ == "__main__":
    key = jax.random.PRNGKey(0)
    k_params, k_x, k_eps = jax.random.split(key, 3)

    B = 8
    params = init_params(k_params)
    x = jax.random.normal(k_x, (B, INPUT_DIM), jnp.float32)
    eps = jax.random.normal(k_eps, (B, LATENT), jnp.float32)  # randn_like(std)

    recon, mu, logvar = vae_forward(x, eps, params)
    jax.block_until_ready((recon, mu, logvar))

    assert recon.shape == (B, INPUT_DIM)
    assert mu.shape == (B, LATENT)
    assert logvar.shape == (B, LATENT)
    assert bool(jnp.all(jnp.isfinite(recon)))
    assert bool(jnp.all(jnp.isfinite(mu)))
    assert bool(jnp.all(jnp.isfinite(logvar)))
    assert bool(jnp.all((recon >= 0.0) & (recon <= 1.0)))  # sigmoid output range

    print("KERNEL_OK")
</pallas_src>

<mosaic_0001>
module attributes {stable_mosaic.version = 11 : i64} {
  func.func @vae_kernel(%arg0: memref<8x64xf32, #tpu.memory_space<vmem>>, %arg1: memref<8x5xf32, #tpu.memory_space<vmem>>, %arg2: memref<64x256xbf16, #tpu.memory_space<vmem>>, %arg3: memref<1x256xf32, #tpu.memory_space<vmem>>, %arg4: memref<1x256xf32, #tpu.memory_space<vmem>>, %arg5: memref<1x256xf32, #tpu.memory_space<vmem>>, %arg6: memref<256x512xbf16, #tpu.memory_space<vmem>>, %arg7: memref<1x512xf32, #tpu.memory_space<vmem>>, %arg8: memref<1x512xf32, #tpu.memory_space<vmem>>, %arg9: memref<1x512xf32, #tpu.memory_space<vmem>>, %arg10: memref<512x256xbf16, #tpu.memory_space<vmem>>, %arg11: memref<1x256xf32, #tpu.memory_space<vmem>>, %arg12: memref<1x256xf32, #tpu.memory_space<vmem>>, %arg13: memref<1x256xf32, #tpu.memory_space<vmem>>, %arg14: memref<256x64xbf16, #tpu.memory_space<vmem>>, %arg15: memref<1x64xf32, #tpu.memory_space<vmem>>, %arg16: memref<5x256xf32, #tpu.memory_space<vmem>>, %arg17: memref<1x256xf32, #tpu.memory_space<vmem>>, %arg18: memref<256x512xbf16, #tpu.memory_space<vmem>>, %arg19: memref<1x512xf32, #tpu.memory_space<vmem>>, %arg20: memref<512x256xbf16, #tpu.memory_space<vmem>>, %arg21: memref<1x256xf32, #tpu.memory_space<vmem>>, %arg22: memref<256x64xbf16, #tpu.memory_space<vmem>>, %arg23: memref<1x64xf32, #tpu.memory_space<vmem>>, %arg24: memref<8x128xf32, #tpu.memory_space<vmem>>) attributes {dimension_semantics = [], scalar_prefetch = 0 : i64, scratch_operands = 0 : i64, tpu.core_type = #tpu.core_type<tc>} {
    %c0 = arith.constant 0 : index
    %c0_0 = arith.constant 0 : index
    %0 = vector.load %arg0[%c0, %c0_0] : memref<8x64xf32, #tpu.memory_space<vmem>>, vector<8x64xf32>
    %1 = arith.truncf %0 : vector<8x64xf32> to vector<8x64xbf16>
    %c0_1 = arith.constant 0 : index
    %c0_2 = arith.constant 0 : index
    %2 = vector.load %arg2[%c0_1, %c0_2] : memref<64x256xbf16, #tpu.memory_space<vmem>>, vector<64x256xbf16>
    %cst = arith.constant dense<0.000000e+00> : vector<8x256xf32>
    %3 = tpu.matmul %1, %2, %cst {dimension_numbers = #tpu.dot_dimension_numbers<[1], [0], [0], [1], [0, 0, 1, 1], [], []>} : vector<8x64xbf16>, vector<64x256xbf16>, vector<8x256xf32> -> vector<8x256xf32>
    %c0_3 = arith.constant 0 : index
    %c0_4 = arith.constant 0 : index
    %4 = vector.load %arg3[%c0_3, %c0_4] : memref<1x256xf32, #tpu.memory_space<vmem>>, vector<1x256xf32>
    %5 = vector.broadcast %4 : vector<1x256xf32> to vector<8x256xf32>
    %6 = arith.addf %3, %5 : vector<8x256xf32>
    %cst_5 = arith.constant dense<0.000000e+00> : vector<256xf32>
    %7 = vector.multi_reduction <add>, %6, %cst_5 [0] : vector<8x256xf32> to vector<256xf32>
    %8 = vector.shape_cast %7 : vector<256xf32> to vector<1x256xf32>
    %cst_6 = arith.constant 8.000000e+00 : f32
    %9 = vector.broadcast %cst_6 : f32 to vector<1x256xf32>
    %10 = arith.divf %8, %9 : vector<1x256xf32>
    %11 = arith.mulf %6, %6 : vector<8x256xf32>
    %cst_7 = arith.constant dense<0.000000e+00> : vector<256xf32>
    %12 = vector.multi_reduction <add>, %11, %cst_7 [0] : vector<8x256xf32> to vector<256xf32>
    %13 = vector.shape_cast %12 : vector<256xf32> to vector<1x256xf32>
    %cst_8 = arith.constant 8.000000e+00 : f32
    %14 = vector.broadcast %cst_8 : f32 to vector<1x256xf32>
    %15 = arith.divf %13, %14 : vector<1x256xf32>
    %16 = arith.mulf %10, %10 : vector<1x256xf32>
    %17 = arith.subf %15, %16 : vector<1x256xf32>
    %cst_9 = arith.constant 0.000000e+00 : f32
    %18 = vector.broadcast %cst_9 : f32 to vector<1x256xf32>
    %19 = arith.maximumf %17, %18 : vector<1x256xf32>
    %20 = vector.broadcast %10 : vector<1x256xf32> to vector<8x256xf32>
    %21 = arith.subf %6, %20 : vector<8x256xf32>
    %cst_10 = arith.constant 9.99999974E-6 : f32
    %22 = vector.broadcast %cst_10 : f32 to vector<1x256xf32>
    %23 = arith.addf %19, %22 : vector<1x256xf32>
    %24 = math.rsqrt %23 : vector<1x256xf32>
    %25 = vector.broadcast %24 : vector<1x256xf32> to vector<8x256xf32>
    %26 = arith.mulf %21, %25 : vector<8x256xf32>
    %c0_11 = arith.constant 0 : index
    %c0_12 = arith.constant 0 : index
    %27 = vector.load %arg4[%c0_11, %c0_12] : memref<1x256xf32, #tpu.memory_space<vmem>>, vector<1x256xf32>
    %28 = vector.broadcast %27 : vector<1x256xf32> to vector<8x256xf32>
    %29 = arith.mulf %26, %28 : vector<8x256xf32>
    %c0_13 = arith.constant 0 : index
    %c0_14 = arith.constant 0 : index
    %30 = vector.load %arg5[%c0_13, %c0_14] : memref<1x256xf32, #tpu.memory_space<vmem>>, vector<1x256xf32>
    %31 = vector.broadcast %30 : vector<1x256xf32> to vector<8x256xf32>
    %32 = arith.addf %29, %31 : vector<8x256xf32>
    %cst_15 = arith.constant 0.000000e+00 : f32
    %33 = vector.broadcast %cst_15 : f32 to vector<8x256xf32>
    %34 = arith.maximumf %32, %33 : vector<8x256xf32>
    %35 = arith.truncf %34 : vector<8x256xf32> to vector<8x256xbf16>
    %c0_16 = arith.constant 0 : index
    %c0_17 = arith.constant 0 : index
    %36 = vector.load %arg6[%c0_16, %c0_17] : memref<256x512xbf16, #tpu.memory_space<vmem>>, vector<256x512xbf16>
    %cst_18 = arith.constant dense<0.000000e+00> : vector<8x512xf32>
    %37 = tpu.matmul %35, %36, %cst_18 {dimension_numbers = #tpu.dot_dimension_numbers<[1], [0], [0], [1], [0, 0, 1, 1], [], []>} : vector<8x256xbf16>, vector<256x512xbf16>, vector<8x512xf32> -> vector<8x512xf32>
    %c0_19 = arith.constant 0 : index
    %c0_20 = arith.constant 0 : index
    %38 = vector.load %arg7[%c0_19, %c0_20] : memref<1x512xf32, #tpu.memory_space<vmem>>, vector<1x512xf32>
    %39 = vector.broadcast %38 : vector<1x512xf32> to vector<8x512xf32>
    %40 = arith.addf %37, %39 : vector<8x512xf32>
    %cst_21 = arith.constant dense<0.000000e+00> : vector<512xf32>
    %41 = vector.multi_reduction <add>, %40, %cst_21 [0] : vector<8x512xf32> to vector<512xf32>
    %42 = vector.shape_cast %41 : vector<512xf32> to vector<1x512xf32>
    %cst_22 = arith.constant 8.000000e+00 : f32
    %43 = vector.broadcast %cst_22 : f32 to vector<1x512xf32>
    %44 = arith.divf %42, %43 : vector<1x512xf32>
    %45 = arith.mulf %40, %40 : vector<8x512xf32>
    %cst_23 = arith.constant dense<0.000000e+00> : vector<512xf32>
    %46 = vector.multi_reduction <add>, %45, %cst_23 [0] : vector<8x512xf32> to vector<512xf32>
    %47 = vector.shape_cast %46 : vector<512xf32> to vector<1x512xf32>
    %cst_24 = arith.constant 8.000000e+00 : f32
    %48 = vector.broadcast %cst_24 : f32 to vector<1x512xf32>
    %49 = arith.divf %47, %48 : vector<1x512xf32>
    %50 = arith.mulf %44, %44 : vector<1x512xf32>
    %51 = arith.subf %49, %50 : vector<1x512xf32>
    %cst_25 = arith.constant 0.000000e+00 : f32
    %52 = vector.broadcast %cst_25 : f32 to vector<1x512xf32>
    %53 = arith.maximumf %51, %52 : vector<1x512xf32>
    %54 = vector.broadcast %44 : vector<1x512xf32> to vector<8x512xf32>
    %55 = arith.subf %40, %54 : vector<8x512xf32>
    %cst_26 = arith.constant 9.99999974E-6 : f32
    %56 = vector.broadcast %cst_26 : f32 to vector<1x512xf32>
    %57 = arith.addf %53, %56 : vector<1x512xf32>
    %58 = math.rsqrt %57 : vector<1x512xf32>
    %59 = vector.broadcast %58 : vector<1x512xf32> to vector<8x512xf32>
    %60 = arith.mulf %55, %59 : vector<8x512xf32>
    %c0_27 = arith.constant 0 : index
    %c0_28 = arith.constant 0 : index
    %61 = vector.load %arg8[%c0_27, %c0_28] : memref<1x512xf32, #tpu.memory_space<vmem>>, vector<1x512xf32>
    %62 = vector.broadcast %61 : vector<1x512xf32> to vector<8x512xf32>
    %63 = arith.mulf %60, %62 : vector<8x512xf32>
    %c0_29 = arith.constant 0 : index
    %c0_30 = arith.constant 0 : index
    %64 = vector.load %arg9[%c0_29, %c0_30] : memref<1x512xf32, #tpu.memory_space<vmem>>, vector<1x512xf32>
    %65 = vector.broadcast %64 : vector<1x512xf32> to vector<8x512xf32>
    %66 = arith.addf %63, %65 : vector<8x512xf32>
    %cst_31 = arith.constant 0.000000e+00 : f32
    %67 = vector.broadcast %cst_31 : f32 to vector<8x512xf32>
    %68 = arith.maximumf %66, %67 : vector<8x512xf32>
    %69 = arith.truncf %68 : vector<8x512xf32> to vector<8x512xbf16>
    %c0_32 = arith.constant 0 : index
    %c0_33 = arith.constant 0 : index
    %70 = vector.load %arg10[%c0_32, %c0_33] : memref<512x256xbf16, #tpu.memory_space<vmem>>, vector<512x256xbf16>
    %cst_34 = arith.constant dense<0.000000e+00> : vector<8x256xf32>
    %71 = tpu.matmul %69, %70, %cst_34 {dimension_numbers = #tpu.dot_dimension_numbers<[1], [0], [0], [1], [0, 0, 1, 1], [], []>} : vector<8x512xbf16>, vector<512x256xbf16>, vector<8x256xf32> -> vector<8x256xf32>
    %c0_35 = arith.constant 0 : index
    %c0_36 = arith.constant 0 : index
    %72 = vector.load %arg11[%c0_35, %c0_36] : memref<1x256xf32, #tpu.memory_space<vmem>>, vector<1x256xf32>
    %73 = vector.broadcast %72 : vector<1x256xf32> to vector<8x256xf32>
    %74 = arith.addf %71, %73 : vector<8x256xf32>
    %cst_37 = arith.constant dense<0.000000e+00> : vector<256xf32>
    %75 = vector.multi_reduction <add>, %74, %cst_37 [0] : vector<8x256xf32> to vector<256xf32>
    %76 = vector.shape_cast %75 : vector<256xf32> to vector<1x256xf32>
    %cst_38 = arith.constant 8.000000e+00 : f32
    %77 = vector.broadcast %cst_38 : f32 to vector<1x256xf32>
    %78 = arith.divf %76, %77 : vector<1x256xf32>
    %79 = arith.mulf %74, %74 : vector<8x256xf32>
    %cst_39 = arith.constant dense<0.000000e+00> : vector<256xf32>
    %80 = vector.multi_reduction <add>, %79, %cst_39 [0] : vector<8x256xf32> to vector<256xf32>
    %81 = vector.shape_cast %80 : vector<256xf32> to vector<1x256xf32>
    %cst_40 = arith.constant 8.000000e+00 : f32
    %82 = vector.broadcast %cst_40 : f32 to vector<1x256xf32>
    %83 = arith.divf %81, %82 : vector<1x256xf32>
    %84 = arith.mulf %78, %78 : vector<1x256xf32>
    %85 = arith.subf %83, %84 : vector<1x256xf32>
    %cst_41 = arith.constant 0.000000e+00 : f32
    %86 = vector.broadcast %cst_41 : f32 to vector<1x256xf32>
    %87 = arith.maximumf %85, %86 : vector<1x256xf32>
    %88 = vector.broadcast %78 : vector<1x256xf32> to vector<8x256xf32>
    %89 = arith.subf %74, %88 : vector<8x256xf32>
    %cst_42 = arith.constant 9.99999974E-6 : f32
    %90 = vector.broadcast %cst_42 : f32 to vector<1x256xf32>
    %91 = arith.addf %87, %90 : vector<1x256xf32>
    %92 = math.rsqrt %91 : vector<1x256xf32>
    %93 = vector.broadcast %92 : vector<1x256xf32> to vector<8x256xf32>
    %94 = arith.mulf %89, %93 : vector<8x256xf32>
    %c0_43 = arith.constant 0 : index
    %c0_44 = arith.constant 0 : index
    %95 = vector.load %arg12[%c0_43, %c0_44] : memref<1x256xf32, #tpu.memory_space<vmem>>, vector<1x256xf32>
    %96 = vector.broadcast %95 : vector<1x256xf32> to vector<8x256xf32>
    %97 = arith.mulf %94, %96 : vector<8x256xf32>
    %c0_45 = arith.constant 0 : index
    %c0_46 = arith.constant 0 : index
    %98 = vector.load %arg13[%c0_45, %c0_46] : memref<1x256xf32, #tpu.memory_space<vmem>>, vector<1x256xf32>
    %99 = vector.broadcast %98 : vector<1x256xf32> to vector<8x256xf32>
    %100 = arith.addf %97, %99 : vector<8x256xf32>
    %cst_47 = arith.constant 0.000000e+00 : f32
    %101 = vector.broadcast %cst_47 : f32 to vector<8x256xf32>
    %102 = arith.maximumf %100, %101 : vector<8x256xf32>
    %103 = arith.truncf %102 : vector<8x256xf32> to vector<8x256xbf16>
    %c0_48 = arith.constant 0 : index
    %c0_49 = arith.constant 0 : index
    %104 = vector.load %arg14[%c0_48, %c0_49] : memref<256x64xbf16, #tpu.memory_space<vmem>>, vector<256x64xbf16>
    %cst_50 = arith.constant dense<0.000000e+00> : vector<8x64xf32>
    %105 = tpu.matmul %103, %104, %cst_50 {dimension_numbers = #tpu.dot_dimension_numbers<[1], [0], [0], [1], [0, 0, 1, 1], [], []>} : vector<8x256xbf16>, vector<256x64xbf16>, vector<8x64xf32> -> vector<8x64xf32>
    %c0_51 = arith.constant 0 : index
    %c0_52 = arith.constant 0 : index
    %106 = vector.load %arg15[%c0_51, %c0_52] : memref<1x64xf32, #tpu.memory_space<vmem>>, vector<1x64xf32>
    %107 = vector.broadcast %106 : vector<1x64xf32> to vector<8x64xf32>
    %108 = arith.addf %105, %107 : vector<8x64xf32>
    %109 = vector.extract_strided_slice %108 {offsets = [0, 0], sizes = [8, 5], strides = [1, 1]} : vector<8x64xf32> to vector<8x5xf32>
    %110 = vector.extract_strided_slice %108 {offsets = [0, 5], sizes = [8, 5], strides = [1, 1]} : vector<8x64xf32> to vector<8x5xf32>
    %cst_53 = arith.constant 5.000000e-01 : f32
    %111 = vector.broadcast %cst_53 : f32 to vector<8x5xf32>
    %112 = arith.mulf %111, %110 : vector<8x5xf32>
    %113 = math.exp %112 : vector<8x5xf32>
    %cst_54 = arith.constant 1.000000e+00 : f32
    %114 = vector.broadcast %cst_54 : f32 to vector<8x5xf32>
    %115 = arith.minimumf %113, %114 : vector<8x5xf32>
    %c0_55 = arith.constant 0 : index
    %c0_56 = arith.constant 0 : index
    %116 = vector.load %arg1[%c0_55, %c0_56] : memref<8x5xf32, #tpu.memory_space<vmem>>, vector<8x5xf32>
    %117 = arith.mulf %116, %115 : vector<8x5xf32>
    %118 = arith.addf %109, %117 : vector<8x5xf32>
    %c0_57 = arith.constant 0 : index
    %c0_58 = arith.constant 0 : index
    %119 = vector.load %arg16[%c0_57, %c0_58] : memref<5x256xf32, #tpu.memory_space<vmem>>, vector<5x256xf32>
    %cst_59 = arith.constant dense<0.000000e+00> : vector<8x256xf32>
    %120 = tpu.matmul %118, %119, %cst_59 {dimension_numbers = #tpu.dot_dimension_numbers<[1], [0], [0], [1], [0, 0, 1, 1], [], []>} : vector<8x5xf32>, vector<5x256xf32>, vector<8x256xf32> -> vector<8x256xf32>
    %c0_60 = arith.constant 0 : index
    %c0_61 = arith.constant 0 : index
    %121 = vector.load %arg17[%c0_60, %c0_61] : memref<1x256xf32, #tpu.memory_space<vmem>>, vector<1x256xf32>
    %122 = vector.broadcast %121 : vector<1x256xf32> to vector<8x256xf32>
    %123 = arith.addf %120, %122 : vector<8x256xf32>
    %cst_62 = arith.constant 0.000000e+00 : f32
    %124 = vector.broadcast %cst_62 : f32 to vector<8x256xf32>
    %125 = arith.maximumf %123, %124 : vector<8x256xf32>
    %126 = arith.truncf %125 : vector<8x256xf32> to vector<8x256xbf16>
    %c0_63 = arith.constant 0 : index
    %c0_64 = arith.constant 0 : index
    %127 = vector.load %arg18[%c0_63, %c0_64] : memref<256x512xbf16, #tpu.memory_space<vmem>>, vector<256x512xbf16>
    %cst_65 = arith.constant dense<0.000000e+00> : vector<8x512xf32>
    %128 = tpu.matmul %126, %127, %cst_65 {dimension_numbers = #tpu.dot_dimension_numbers<[1], [0], [0], [1], [0, 0, 1, 1], [], []>} : vector<8x256xbf16>, vector<256x512xbf16>, vector<8x512xf32> -> vector<8x512xf32>
    %c0_66 = arith.constant 0 : index
    %c0_67 = arith.constant 0 : index
    %129 = vector.load %arg19[%c0_66, %c0_67] : memref<1x512xf32, #tpu.memory_space<vmem>>, vector<1x512xf32>
    %130 = vector.broadcast %129 : vector<1x512xf32> to vector<8x512xf32>
    %131 = arith.addf %128, %130 : vector<8x512xf32>
    %cst_68 = arith.constant 0.000000e+00 : f32
    %132 = vector.broadcast %cst_68 : f32 to vector<8x512xf32>
    %133 = arith.maximumf %131, %132 : vector<8x512xf32>
    %134 = arith.truncf %133 : vector<8x512xf32> to vector<8x512xbf16>
    %c0_69 = arith.constant 0 : index
    %c0_70 = arith.constant 0 : index
    %135 = vector.load %arg20[%c0_69, %c0_70] : memref<512x256xbf16, #tpu.memory_space<vmem>>, vector<512x256xbf16>
    %cst_71 = arith.constant dense<0.000000e+00> : vector<8x256xf32>
    %136 = tpu.matmul %134, %135, %cst_71 {dimension_numbers = #tpu.dot_dimension_numbers<[1], [0], [0], [1], [0, 0, 1, 1], [], []>} : vector<8x512xbf16>, vector<512x256xbf16>, vector<8x256xf32> -> vector<8x256xf32>
    %c0_72 = arith.constant 0 : index
    %c0_73 = arith.constant 0 : index
    %137 = vector.load %arg21[%c0_72, %c0_73] : memref<1x256xf32, #tpu.memory_space<vmem>>, vector<1x256xf32>
    %138 = vector.broadcast %137 : vector<1x256xf32> to vector<8x256xf32>
    %139 = arith.addf %136, %138 : vector<8x256xf32>
    %cst_74 = arith.constant 0.000000e+00 : f32
    %140 = vector.broadcast %cst_74 : f32 to vector<8x256xf32>
    %141 = arith.maximumf %139, %140 : vector<8x256xf32>
    %142 = arith.truncf %141 : vector<8x256xf32> to vector<8x256xbf16>
    %c0_75 = arith.constant 0 : index
    %c0_76 = arith.constant 0 : index
    %143 = vector.load %arg22[%c0_75, %c0_76] : memref<256x64xbf16, #tpu.memory_space<vmem>>, vector<256x64xbf16>
    %cst_77 = arith.constant dense<0.000000e+00> : vector<8x64xf32>
    %144 = tpu.matmul %142, %143, %cst_77 {dimension_numbers = #tpu.dot_dimension_numbers<[1], [0], [0], [1], [0, 0, 1, 1], [], []>} : vector<8x256xbf16>, vector<256x64xbf16>, vector<8x64xf32> -> vector<8x64xf32>
    %c0_78 = arith.constant 0 : index
    %c0_79 = arith.constant 0 : index
    %145 = vector.load %arg23[%c0_78, %c0_79] : memref<1x64xf32, #tpu.memory_space<vmem>>, vector<1x64xf32>
    %146 = vector.broadcast %145 : vector<1x64xf32> to vector<8x64xf32>
    %147 = arith.addf %144, %146 : vector<8x64xf32>
    %148 = arith.negf %147 : vector<8x64xf32>
    %149 = math.exp %148 : vector<8x64xf32>
    %cst_80 = arith.constant 1.000000e+00 : f32
    %150 = vector.broadcast %cst_80 : f32 to vector<8x64xf32>
    %151 = arith.addf %150, %149 : vector<8x64xf32>
    %152 = arith.divf %150, %151 : vector<8x64xf32>
    %153 = tpu.concatenate %152, %108 in 1 : vector<8x64xf32>, vector<8x64xf32> -> vector<8x128xf32>
    %c0_81 = arith.constant 0 : index
    %c0_82 = arith.constant 0 : index
    %154 = vector.load %arg24[%c0_81, %c0_82] : memref<8x128xf32, #tpu.memory_space<vmem>>, vector<8x128xf32>
    tpu.vector_store %arg24[%c0_81, %c0_82], %153 {strides = array<i32>} : memref<8x128xf32, #tpu.memory_space<vmem>>, vector<8x128xf32>,
    return
  }
}

</mosaic_0001>

<bundles_post_ra>
// kernel: vae_forward.1
= control target key start
LH: loop header
LB: loop body
LE: loop exit
PB: predicated region body
PF: predicated region fallthrough
CT: control target
= control target key end

     0   :  { %s5156_s0 = inlined_call_operand.vmem [shape: f32[8,64], index: 0, kind: input, shape index: {}]   ;;  %s5157_s1 = inlined_call_operand.vmem [shape: f32[8,5], index: 1, kind: input, shape index: {}]   ;;  %s5158_s2 = inlined_call_operand.vmem [shape: bf16[64,256], index: 2, kind: input, shape index: {}]   ;;  %s5159_s3 = inlined_call_operand.vmem [shape: f32[1,256], index: 3, kind: input, shape index: {}]   ;;  %s5160_s4 = inlined_call_operand.vmem [shape: f32[1,256], index: 4, kind: input, shape index: {}]   ;;  %s5161_s5 = inlined_call_operand.vmem [shape: f32[1,256], index: 5, kind: input, shape index: {}]   ;;  %s5162_s6 = inlined_call_operand.hbm [shape: bf16[256,512], index: 6, kind: input, shape index: {}]   ;;  %s5163_s7 = inlined_call_operand.vmem [shape: f32[1,512], index: 7, kind: input, shape index: {}]   ;;  %s5164_s8 = inlined_call_operand.vmem [shape: f32[1,512], index: 8, kind: input, shape index: {}]   ;;  %s5165_s9 = inlined_call_operand.vmem [shape: f32[1,512], index: 9, kind: input, shape index: {}]   ;;  %s5166_s10 = inlined_call_operand.hbm [shape: bf16[512,256], index: 10, kind: input, shape index: {}]   ;;  %s5167_s11 = inlined_call_operand.vmem [shape: f32[1,256], index: 11, kind: input, shape index: {}]   ;;  %s5168_s12 = inlined_call_operand.vmem [shape: f32[1,256], index: 12, kind: input, shape index: {}]   ;;  %s5169_s13 = inlined_call_operand.vmem [shape: f32[1,256], index: 13, kind: input, shape index: {}]   ;;  %s5170_s14 = inlined_call_operand.vmem [shape: bf16[256,64], index: 14, kind: input, shape index: {}]   ;;  %s5171_s15 = inlined_call_operand.vmem [shape: f32[1,64], index: 15, kind: input, shape index: {}]   ;;  %s5172_s16 = inlined_call_operand.vmem [shape: f32[5,256], index: 16, kind: input, shape index: {}]   ;;  %s5173_s17 = inlined_call_operand.vmem [shape: f32[1,256], index: 17, kind: input, shape index: {}]   ;;  %s5174_s18 = inlined_call_operand.hbm [shape: bf16[256,512], index: 18, kind: input, shape index: {}]   ;;  %s5175_s19 = inlined_call_operand.vmem [shape: f32[1,512], index: 19, kind: input, shape index: {}]   ;;  %s5176_s20 = inlined_call_operand.hbm [shape: bf16[512,256], index: 20, kind: input, shape index: {}]   ;;  %s5177_s21 = inlined_call_operand.vmem [shape: f32[1,256], index: 21, kind: input, shape index: {}]   ;;  %s5178_s22 = inlined_call_operand.vmem [shape: bf16[256,64], index: 22, kind: input, shape index: {}]   ;;  %s5179_s23 = inlined_call_operand.vmem [shape: f32[1,64], index: 23, kind: input, shape index: {}]   ;;  %s5180_s24 = inlined_call_operand.vmem [shape: f32[8,128], index: 24, kind: output, shape index: {}]  }
   0x1   :  { %5182 = sst [smem:[#allocation12_spill]] %s5156_s0 }
   0x2   :  { %5183 = sst [smem:[#allocation13_spill]] %s5157_s1 }
   0x3   :  { %5184 = sst [smem:[#allocation14_spill]] %s5158_s2 }
   0x4   :  { %5185 = sst [smem:[#allocation15_spill]] %s5159_s3 }
   0x5   :  { %5186 = sst [smem:[#allocation16_spill]] %s5160_s4 }
   0x6   :  { %5187 = sst [smem:[#allocation17_spill]] %s5161_s5 }
   0x7   :  { %5188 = sst [smem:[#allocation18_spill]] %s5162_s6 }
   0x8   :  { %5189 = sst [smem:[#allocation19_spill]] %s5163_s7 }
   0x9   :  { %5190 = sst [smem:[#allocation20_spill]] %s5164_s8 }
   0xa   :  { %5191 = sst [smem:[#allocation21_spill]] %s5180_s24 }
   0xb   :  { %29 = vsyncpa [#allocation3], 0 }
   0xc   :  { %30 = vsyncpa [#allocation5], 0  ;;  %s67_s27 = sshll.u32 %s5166_s10, 4  ;;  %s68_s27 = int_to_ptr.hbm [resolvable:$true] %s67_s27 }
   0xd   :  { %31 = vsyncpa [#allocation8], 0  ;;  %s4602_s28 = smov [#allocation4]   ;;  %s5192_s0 = sld [smem:[#allocation18_spill]] }
   0xe   :  { %s69_s6 = sshll.u32 %s4602_s28, 4  ;;  %s4603_s30 = smov 128   ;;  %s70_s6 = int_to_ptr.vmem [resolvable:$true] %s69_s6 }
   0xf   :  { %s4604_s3 = smov 8   ;;  %s4605_s25 = smov [#allocation2]  }
  0x10   :  { %75 = dma.hbm_to_vmem [thread:$0]  %s68_s27, 8192, %s70_s6, [#allocation5], %s4603_s30, %s4603_s30, %s4604_s3  }
  0x11   :  { %s50_s8 = sshll.u32 %s4605_s25, 4  ;;  %s4606_s4 = smov 256   ;;  %s51_s8 = int_to_ptr.vmem [resolvable:$true] %s50_s8 }
  0x12   :  { %s4607_s1 = smov 16   ;;  %s94_s26 = sshll.u32 %s5174_s18, 4  ;;  %s95_s26 = int_to_ptr.hbm [resolvable:$true] %s94_s26 }
  0x13   :  { %s48_s7 = sshll.u32 %s5192_s0, 4  ;;  %s4608_s28 = smov [#allocation6]   ;;  %s49_s7 = int_to_ptr.hbm [resolvable:$true] %s48_s7 }
  0x14   :  { %56 = dma.hbm_to_vmem [thread:$0]  %s49_s7, 8192, %s51_s8, [#allocation3], %s4606_s4, %s4606_s4, %s4607_s1  }
  0x15   :  { %s96_s24 = sshll.u32 %s4608_s28, 4  ;;  %s109_s0 = sshll.u32 %s5176_s20, 4  ;;  %s97_s24 = int_to_ptr.vmem [resolvable:$true] %s96_s24  ;;  %s110_s0 = int_to_ptr.hbm [resolvable:$true] %s109_s0 }
  0x16   :  { %102 = dma.hbm_to_vmem [thread:$0]  %s95_s26, 8192, %s97_s24, [#allocation5], %s4606_s4, %s4606_s4, %s4607_s1  }
  0x17   :  { %s4609_s27 = smov [#allocation7]  }
  0x18   :  { %s111_s6 = sshll.u32 %s4609_s27, 4  ;;  %s112_s6 = int_to_ptr.vmem [resolvable:$true] %s111_s6 }
  0x19   :  { %117 = dma.hbm_to_vmem [thread:$0]  %s110_s0, 8192, %s112_s6, [#allocation8], %s4603_s30, %s4603_s30, %s4604_s3  }
  0x1a   :  { %4596 = dma.done.wait [#allocation3], 8192  }
  0x1b   :  { %4597 = vsyncadd [#allocation3], 4294959104 }
  0x1c   :  { %4598 = dma.done.wait [#allocation5], 16384  }
  0x1d   :  { %4599 = vsyncadd [#allocation5], 4294950912 }
  0x1e   :  { %4600 = dma.done.wait [#allocation8], 8192  }
  0x1f   :  { %4601 = vsyncadd [#allocation8], 4294959104  ;;  %s5193_s25 = sld [smem:[#allocation14_spill]]  ;;  %vm197_vm0 = vcmask 523264   ;;  %v3124_v26 = vld [vmem:[#allocation2 + $0xe0] sm:$0xf] }
  0x20   :  { %s5194_s27 = sld [smem:[#allocation12_spill]]  ;;  %v4205_v27 = vld [vmem:[#allocation2 + $0xec] sm:$0xf0]  ;;  %v3252_v29 = vld [vmem:[#allocation2 + $0x1e0] sm:$0xf]  ;;  %v4610_v57 = vmov 8.0  }
  0x21   :  { %v3125_v28 = vor.u32 %v4205_v27, %v3124_v26  ;;  %v4237_v30 = vld [vmem:[#allocation2 + $0x1ec] sm:$0xf0]  ;;  %v4203_v31 = vld [vmem:[#allocation2 + $0xe4] sm:$0xf]  ;;  %v3126_v33 = vld [vmem:[#allocation2 + $0xf0] sm:$0xf0]  ;;  %4476 = vrcp.f32 %v4610_v57 }
  0x22   :  { %v3253_v32 = vor.u32 %v4237_v30, %v3252_v29  ;;  %v4235_v34 = vld [vmem:[#allocation2 + $0x1e4] sm:$0xf]  ;;  %v3129_v35 = vor.u32 %v4203_v31, %v3126_v33  ;;  %v3254_v36 = vld [vmem:[#allocation2 + $0x1f0] sm:$0xf0]  ;;  %v3108_v38 = vld [vmem:[#allocation2 + $0xc0] sm:$0xf] }
  0x23   :  { %v3257_v37 = vor.u32 %v4235_v34, %v3254_v36  ;;  %v4201_v39 = vld [vmem:[#allocation2 + $0xcc] sm:$0xf0]  ;;  %v3236_v40 = vld [vmem:[#allocation2 + $0x1c0] sm:$0xf]  ;;  %v4199_v43 = vld [vmem:[#allocation2 + $0xc4] sm:$0xf] }
  0x24   :  { %736 = vmatpush.bf16.msra.mxu0 %v3129_v35  ;;  %v3109_v41 = vor.u32 %v4201_v39, %v3108_v38  ;;  %v4233_v42 = vld [vmem:[#allocation2 + $0x1cc] sm:$0xf0]  ;;  %v3110_v44 = vld [vmem:[#allocation2 + $0xd0] sm:$0xf0]  ;;  %v4231_v47 = vld [vmem:[#allocation2 + $0x1c4] sm:$0xf] }
  0x25   :  { %v3002_v0 = vld [vmem:[%s5193_s25 + $0x30] sm:$0xf]  ;;  %v4174_v1 = vld [vmem:[%s5193_s25 + $0x34] sm:$0xf0]  ;;  %v4173_v2 = vld [vmem:[%s5193_s25 + $0x34] sm:$0xf]  ;;  %749 = vmatpush.bf16.msra.mxu1 %v3257_v37  ;;  %v3237_v45 = vor.u32 %v4233_v42, %v3236_v40  ;;  %v3113_v46 = vor.u32 %v4199_v43, %v3110_v44 }
  0x26   :  { %v3003_v3 = vor.u32 %v4174_v1, %v3002_v0  ;;  %v3004_v4 = vld [vmem:[%s5193_s25 + $0x38] sm:$0xf0]  ;;  %v2994_v5 = vld [vmem:[%s5193_s25 + $0x20] sm:$0xf]  ;;  %v4172_v6 = vld [vmem:[%s5193_s25 + $0x24] sm:$0xf0] }
  0x27   :  { %v3007_v7 = vor.u32 %v4173_v2, %v3004_v4  ;;  %v4171_v8 = vld [vmem:[%s5193_s25 + $0x24] sm:$0xf]  ;;  %v2996_v9 = vld [vmem:[%s5193_s25 + $0x28] sm:$0xf0]  ;;  %v2995_v10 = vor.u32 %v4172_v6, %v2994_v5  ;;  %v2986_v12 = vld [vmem:[%s5193_s25 + $0x10] sm:$0xf] }
  0x28   :  { %205 = vmatpush.bf16.msra.mxu2 %v3003_v3  ;;  %v2999_v11 = vor.u32 %v4171_v8, %v2996_v9  ;;  %v4170_v13 = vld [vmem:[%s5193_s25 + $0x14] sm:$0xf0]  ;;  %v4169_v14 = vld [vmem:[%s5193_s25 + $0x14] sm:$0xf]  ;;  %v2988_v15 = vld [vmem:[%s5193_s25 + $0x18] sm:$0xf0]  ;;  %737 = vmatpush.bf16.msra.mxu0 %v3113_v46 }
  0x29   :  { %218 = vmatpush.bf16.msra.mxu3 %v3007_v7  ;;  %v2987_v16 = vor.u32 %v4170_v13, %v2986_v12  ;;  %v2991_v17 = vor.u32 %v4169_v14, %v2988_v15  ;;  %v2978_v18 = vld [vmem:[%s5193_s25] sm:$0xf]  ;;  %v4168_v19 = vld [vmem:[%s5193_s25 + $0x4] sm:$0xf0]  ;;  %v4167_v20 = vld [vmem:[%s5193_s25 + $0x4] sm:$0xf] }
  0x2a   :  { %v2980_v21 = vld [vmem:[%s5193_s25 + $0x8] sm:$0xf0]  ;;  %v2979_v22 = vor.u32 %v4168_v19, %v2978_v18  ;;  %v141_v23 = vld [vmem:[%s5194_s27] sm:$0xff]  ;;  %v3238_v48 = vld [vmem:[#allocation2 + $0x1d0] sm:$0xf0]  ;;  %s5195_s18 = sld [smem:[#allocation15_spill]] }
  0x2b   :  { %v2983_v24 = vor.u32 %v4167_v20, %v2980_v21  ;;  %v142_v25 = vpack.c.bf16 %v141_v23, %v141_v23  ;;  %v3241_v49 = vor.u32 %v4231_v47, %v3238_v48  ;;  %v3092_v50 = vld [vmem:[#allocation2 + $0xa0] sm:$0xf]  ;;  %v4197_v51 = vld [vmem:[#allocation2 + $0xac] sm:$0xf0]  ;;  %v4195_v55 = vld [vmem:[#allocation2 + $0xa4] sm:$0xf] }
  0x2c   :  { %206 = vmatpush.bf16.msra.mxu2 %v2995_v10  ;;  %v3220_v52 = vld [vmem:[#allocation2 + $0x1a0] sm:$0xf]  ;;  %v3093_v53 = vor.u32 %v4197_v51, %v3092_v50  ;;  %v4229_v54 = vld [vmem:[#allocation2 + $0x1ac] sm:$0xf0]  ;;  %v3094_v56 = vld [vmem:[#allocation2 + $0xb0] sm:$0xf0] }
  0x2d   :  { %219 = vmatpush.bf16.msra.mxu3 %v2999_v11  ;;  %750 = vmatpush.bf16.msra.mxu1 %v3241_v49  ;;  %v3221_v58 = vor.u32 %v4229_v54, %v3220_v52  ;;  %v3097_v59 = vor.u32 %v4195_v55, %v3094_v56  ;;  %v4227_v60 = vld [vmem:[#allocation2 + $0x1a4] sm:$0xf]  ;;  %v3222_v61 = vld [vmem:[#allocation2 + $0x1b0] sm:$0xf0]  ;;  %v3076_v63 = vld [vmem:[#allocation2 + $0x80] sm:$0xf]  ;;  %v4803_v11 = vpop.eup %4476 }
  0x2e   :  { %v3225_v62 = vor.u32 %v4227_v60, %v3222_v61  ;;  %v4193_v0 = vld [vmem:[#allocation2 + $0x8c] sm:$0xf0]  ;;  %v3204_v1 = vld [vmem:[#allocation2 + $0x180] sm:$0xf]  ;;  %v4191_v4 = vld [vmem:[#allocation2 + $0x84] sm:$0xf]  ;;  %vm244_vm1 = vweird.f32 %v4803_v11 }
  0x2f   :  { %738 = vmatpush.bf16.msra.mxu0 %v3097_v59  ;;  %v3077_v2 = vor.u32 %v4193_v0, %v3076_v63  ;;  %v4225_v3 = vld [vmem:[#allocation2 + $0x18c] sm:$0xf0]  ;;  %v3078_v5 = vld [vmem:[#allocation2 + $0x90] sm:$0xf0]  ;;  %v4223_v8 = vld [vmem:[#allocation2 + $0x184] sm:$0xf] }
  0x30   :  { %207 = vmatpush.bf16.msra.mxu2 %v2987_v16  ;;  %v3205_v6 = vor.u32 %v4225_v3, %v3204_v1  ;;  %v3081_v7 = vor.u32 %v4191_v4, %v3078_v5  ;;  %v3206_v9 = vld [vmem:[#allocation2 + $0x190] sm:$0xf0]  ;;  %v3060_v12 = vld [vmem:[#allocation2 + $0x60] sm:$0xf]  ;;  %v4189_v13 = vld [vmem:[#allocation2 + $0x6c] sm:$0xf0] }
  0x31   :  { %220 = vmatpush.bf16.msra.mxu3 %v2991_v17  ;;  %751 = vmatpush.bf16.msra.mxu1 %v3225_v62  ;;  %v3209_v10 = vor.u32 %v4223_v8, %v3206_v9  ;;  %v3188_v14 = vld [vmem:[#allocation2 + $0x160] sm:$0xf]  ;;  %v3061_v15 = vor.u32 %v4189_v13, %v3060_v12  ;;  %v4221_v16 = vld [vmem:[#allocation2 + $0x16c] sm:$0xf0]  ;;  %v4187_v17 = vld [vmem:[#allocation2 + $0x64] sm:$0xf] }
  0x32   :  { %v3062_v18 = vld [vmem:[#allocation2 + $0x70] sm:$0xf0]  ;;  %v3189_v19 = vor.u32 %v4221_v16, %v3188_v14  ;;  %v4219_v21 = vld [vmem:[#allocation2 + $0x164] sm:$0xf]  ;;  %v151_v23 = vld [vmem:[%s5195_s18] sm:$0x3] }
  0x33   :  { %739 = vmatpush.bf16.msra.mxu0 %v3081_v7  ;;  %v3065_v20 = vor.u32 %v4187_v17, %v3062_v18  ;;  %v3044_v26 = vld [vmem:[#allocation2 + $0x40] sm:$0xf]  ;;  %v4185_v27 = vld [vmem:[#allocation2 + $0x4c] sm:$0xf0]  ;;  %v4183_v31 = vld [vmem:[#allocation2 + $0x44] sm:$0xf] }
  0x34   :  { %208 = vmatpush.bf16.msra.mxu2 %v2979_v22  ;;  %v3190_v22 = vld [vmem:[#allocation2 + $0x170] sm:$0xf0]  ;;  %v3045_v29 = vor.u32 %v4185_v27, %v3044_v26  ;;  %v4217_v30 = vld [vmem:[#allocation2 + $0x14c] sm:$0xf0]  ;;  %v153_v33 = vperm.slane %v151_v23, 0  ;;  %v154_v39 = vperm.slane %v151_v23, 1 }
  0x35   :  { %221 = vmatpush.bf16.msra.mxu3 %v2983_v24  ;;  %752 = vmatpush.bf16.msra.mxu1 %v3209_v10  ;;  %v240_v24 = vmul.f32 8.0, %v4803_v11  ;;  %v4215_v36 = vld [vmem:[#allocation2 + $0x144] sm:$0xf]  ;;  %v3174_v37 = vld [vmem:[#allocation2 + $0x150] sm:$0xf0]  ;;  %s5196_s10 = sld [smem:[#allocation16_spill]] }
  0x36   :  { %v3177_v40 = vor.u32 %v4215_v36, %v3174_v37  ;;  %v4181_v42 = vld [vmem:[#allocation2 + $0x2c] sm:$0xf0]  ;;  %v3156_v43 = vld [vmem:[#allocation2 + $0x120] sm:$0xf]  ;;  %v4179_v47 = vld [vmem:[#allocation2 + $0x24] sm:$0xf] }
  0x37   :  { %3008 = vmatmul.msk.bf16.vlgmr.msra.gmra.mxu2 %vm197_vm0, %v142_v25  ;;  %740 = vmatpush.bf16.msra.mxu0 %v3065_v20  ;;  %v241_v38 = vsub.f32 1.0, %v240_v24  ;;  %v4213_v46 = vld [vmem:[#allocation2 + $0x12c] sm:$0xf0]  ;;  %v3030_v48 = vld [vmem:[#allocation2 + $0x30] sm:$0xf0]  ;;  %s5197_s30 = sld [smem:[#allocation17_spill]] }
  0x38   :  { %3009 = vmatmul.msk.bf16.vlgmr.msra.gmra.mxu3 %vm197_vm0, %v142_v25  ;;  %710 = vmatpush.bf16.msrb.mxu2 %v3125_v28  ;;  %v3193_v25 = vor.u32 %v4219_v21, %v3190_v22  ;;  %v3172_v28 = vld [vmem:[#allocation2 + $0x140] sm:$0xf]  ;;  %v3157_v51 = vor.u32 %v4213_v46, %v3156_v43  ;;  %v3033_v52 = vor.u32 %v4179_v47, %v3030_v48  ;;  %v3158_v54 = vld [vmem:[#allocation2 + $0x130] sm:$0xf0]  ;;  %v4177_v60 = vld [vmem:[#allocation2 + $0xc] sm:$0xf0] }
  0x39   :  { %723 = vmatpush.bf16.msrb.mxu3 %v3253_v32  ;;  %v3046_v32 = vld [vmem:[#allocation2 + $0x50] sm:$0xf0]  ;;  %v3173_v34 = vor.u32 %v4217_v30, %v3172_v28  ;;  %v3012_v59 = vld [vmem:[#allocation2] sm:$0xf]  ;;  %v242_v61 = vmul.f32 %v4803_v11, %v241_v38  ;;  %v4207_v12 = vld [vmem:[#allocation2 + $0x104] sm:$0xf] }
  0x3a   :  { %753 = vmatpush.bf16.msra.mxu1 %v3193_v25  ;;  %v3049_v35 = vor.u32 %v4183_v31, %v3046_v32  ;;  %v3013_v0 = vor.u32 %v4177_v60, %v3012_v59  ;;  %v3140_v1 = vld [vmem:[#allocation2 + $0x100] sm:$0xf]  ;;  %v3014_v7 = vld [vmem:[#allocation2 + $0x10] sm:$0xf0]  ;;  %v3132_v17 = vld [vmem:[#allocation2 + $0xe8] sm:$0xf] }
  0x3b   :  { %v3142_v13 = vld [vmem:[#allocation2 + $0x110] sm:$0xf0]  ;;  %v4206_v18 = vld [vmem:[#allocation2 + $0xf4] sm:$0xf0]  ;;  %v3260_v24 = vld [vmem:[#allocation2 + $0x1e8] sm:$0xf] }
  0x3c   :  { %711 = vmatpush.bf16.msrb.mxu2 %v3109_v41  ;;  %v3028_v41 = vld [vmem:[#allocation2 + $0x20] sm:$0xf]  ;;  %741 = vmatpush.bf16.msra.mxu0 %v3049_v35  ;;  %v3145_v16 = vor.u32 %v4207_v12, %v3142_v13  ;;  %v3133_v23 = vor.u32 %v4206_v18, %v3132_v17  ;;  %v4238_v25 = vld [vmem:[#allocation2 + $0x1f4] sm:$0xf0]  ;;  %v4204_v30 = vld [vmem:[#allocation2 + $0xec] sm:$0xf] }
  0x3d   :  { %724 = vmatpush.bf16.msrb.mxu3 %v3237_v45  ;;  %v3029_v45 = vor.u32 %v4181_v42, %v3028_v41  ;;  %v3134_v31 = vld [vmem:[#allocation2 + $0xf8] sm:$0xf0]  ;;  %v4236_v35 = vld [vmem:[#allocation2 + $0x1ec] sm:$0xf]  ;;  %v4202_v41 = vld [vmem:[#allocation2 + $0xd4] sm:$0xf0] }
  0x3e   :  { %754 = vmatpush.bf16.msra.mxu1 %v3177_v40  ;;  %v3262_v36 = vld [vmem:[#allocation2 + $0x1f8] sm:$0xf0]  ;;  %v3116_v40 = vld [vmem:[#allocation2 + $0xc8] sm:$0xf]  ;;  %v4234_v47 = vld [vmem:[#allocation2 + $0x1d4] sm:$0xf0] }
  0x3f   :  { %v3244_v46 = vld [vmem:[#allocation2 + $0x1c8] sm:$0xf]  ;;  %v3246_v59 = vld [vmem:[#allocation2 + $0x1d8] sm:$0xf0]  ;;  %v4194_v17 = vld [vmem:[#allocation2 + $0x94] sm:$0xf0] }
  0x40   :  { %712 = vmatpush.bf16.msrb.mxu2 %v3093_v53  ;;  %v4211_v53 = vld [vmem:[#allocation2 + $0x124] sm:$0xf]  ;;  %742 = vmatpush.bf16.msra.mxu0 %v3033_v52  ;;  %v4200_v52 = vld [vmem:[#allocation2 + $0xcc] sm:$0xf]  ;;  %v3230_v12 = vld [vmem:[#allocation2 + $0x1b8] sm:$0xf0] }
  0x41   :  { %725 = vmatpush.bf16.msrb.mxu3 %v3221_v58  ;;  %v3161_v56 = vor.u32 %v4211_v53, %v3158_v54  ;;  %v3118_v53 = vld [vmem:[#allocation2 + $0xd8] sm:$0xf0]  ;;  %v3084_v13 = vld [vmem:[#allocation2 + $0x88] sm:$0xf]  ;;  %s5198_s1 = sld [smem:[#allocation19_spill]]  ;;  %s4611_s29 = smov 123  }
  0x42   :  { %v3212_v18 = vld [vmem:[#allocation2 + $0x188] sm:$0xf]  ;;  %s5199_s28 = sld [smem:[#allocation20_spill]] }
  0x43   :  { %755 = vmatpush.bf16.msra.mxu1 %v3161_v56  ;;  %s5200_s0 = sld [smem:[#allocation13_spill]] }
  0x44   :  { %713 = vmatpush.bf16.msrb.mxu2 %v3077_v2  ;;  %v4209_v2 = vld [vmem:[#allocation2 + $0x10c] sm:$0xf0]  ;;  %s5201_s24 = sld [smem:[#allocation21_spill]] }
  0x45   :  { %726 = vmatpush.bf16.msrb.mxu3 %v3205_v6  ;;  %v3141_v5 = vor.u32 %v4209_v2, %v3140_v1  ;;  %v4175_v6 = vld [vmem:[#allocation2 + $0x4] sm:$0xf] }
  0x46   :  { %v3017_v10 = vor.u32 %v4175_v6, %v3014_v7  ;;  %v3102_v6 = vld [vmem:[#allocation2 + $0xb8] sm:$0xf0] }
  0x47   :  { %756 = vmatpush.bf16.msra.mxu1 %v3145_v16 }
  0x48   :  { %714 = vmatpush.bf16.msrb.mxu2 %v3061_v15  ;;  %743 = vmatpush.bf16.msra.mxu0 %v3017_v10  ;;  %v4228_v10 = vld [vmem:[#allocation2 + $0x1ac] sm:$0xf] }
  0x49   :  { %727 = vmatpush.bf16.msrb.mxu3 %v3189_v19  ;;  %v243_v19 = vadd.f32 %v4803_v11, %v242_v61 }
  0x4b   :  { %v4827_v42 = vsel %vm244_vm1, %v4803_v11, %v243_v19  ;;  %v4226_v19 = vld [vmem:[#allocation2 + $0x194] sm:$0xf0] }
  0x4c   :  { %715 = vmatpush.bf16.msrb.mxu2 %v3045_v29  ;;  %v3261_v29 = vor.u32 %v4238_v25, %v3260_v24  ;;  %v4192_v24 = vld [vmem:[#allocation2 + $0x8c] sm:$0xf]  ;;  %v3086_v25 = vld [vmem:[#allocation2 + $0x98] sm:$0xf0] }
  0x4d   :  { %728 = vmatpush.bf16.msrb.mxu3 %v3173_v34  ;;  %v3137_v34 = vor.u32 %v4204_v30, %v3134_v31 }
  0x4f   :  { %788 = vmatpush.bf16.msrb.mxu0 %v3137_v34  ;;  %v4190_v34 = vld [vmem:[#allocation2 + $0x74] sm:$0xf0] }
  0x50   :  { %716 = vmatpush.bf16.msrb.mxu2 %v3029_v45  ;;  %v3117_v45 = vor.u32 %v4202_v41, %v3116_v40  ;;  %v4188_v41 = vld [vmem:[#allocation2 + $0x6c] sm:$0xf] }
  0x51   :  { %729 = vmatpush.bf16.msrb.mxu3 %v3157_v51  ;;  %v3245_v51 = vor.u32 %v4234_v47, %v3244_v46  ;;  %v3198_v46 = vld [vmem:[#allocation2 + $0x178] sm:$0xf0]  ;;  %v3052_v47 = vld [vmem:[#allocation2 + $0x48] sm:$0xf] }
  0x54   :  { %717 = vmatpush.bf16.msrb.mxu2 %v3013_v0  ;;  %v3228_v0 = vld [vmem:[#allocation2 + $0x1a8] sm:$0xf] }
  0x55   :  { %730 = vmatpush.bf16.msrb.mxu3 %v3141_v5  ;;  %v4196_v5 = vld [vmem:[#allocation2 + $0xac] sm:$0xf] }
  0x56   :  { %v3105_v16 = vor.u32 %v4196_v5, %v3102_v6  ;;  %v3038_v5 = vld [vmem:[#allocation2 + $0x38] sm:$0xf0]  ;;  %v4212_v6 = vld [vmem:[#allocation2 + $0x12c] sm:$0xf] }
  0x58   :  { %762 = vmatpush.bf16.msra.mxu2 %v3133_v23  ;;  %v3213_v23 = vor.u32 %v4226_v19, %v3212_v18 }
  0x59   :  { %775 = vmatpush.bf16.msra.mxu3 %v3261_v29  ;;  %v3214_v29 = vld [vmem:[#allocation2 + $0x198] sm:$0xf0] }
  0x5c   :  { %763 = vmatpush.bf16.msra.mxu2 %v3117_v45  ;;  %v4220_v45 = vld [vmem:[#allocation2 + $0x16c] sm:$0xf] }
  0x5d   :  { %776 = vmatpush.bf16.msra.mxu3 %v3245_v51  ;;  %v3180_v51 = vld [vmem:[#allocation2 + $0x148] sm:$0xf] }
  0xba   :  { %v210_v44 = vpop.f32.mrf.mxu2 }
  0xbb   :  { %v4809_v49 = vadd.f32 %v210_v44, %v153_v33  ;;  %v223_v50 = vpop.f32.mrf.mxu3 }
  0xbc   :  { %v4811_v55 = vadd.f32 %v223_v50, %v154_v39  ;;  %v3265_v39 = vor.u32 %v4236_v35, %v3262_v36 }
  0xbd   :  { %v227_v57 = vrot.slane %v4809_v49, 4  ;;  %v248_v58 = vmul.f32 %v4809_v49, %v4809_v49 }
  0xbe   :  { %v233_v62 = vrot.slane %v4811_v55, 4  ;;  %v249_v63 = vmul.f32 %v4811_v55, %v4811_v55  ;;  %801 = vmatpush.bf16.msrb.mxu1 %v3265_v39 }
  0xbf   :  { %v228_v3 = vadd.f32 %v227_v57, %v4809_v49  ;;  %v250_v4 = vrot.slane %v248_v58, 4  ;;  %v3121_v57 = vor.u32 %v4200_v52, %v3118_v53  ;;  %v4218_v52 = vld [vmem:[#allocation2 + $0x154] sm:$0xf0] }
  0xc0   :  { %v234_v8 = vadd.f32 %v233_v62, %v4811_v55  ;;  %v256_v9 = vrot.slane %v249_v63, 4  ;;  %v3100_v62 = vld [vmem:[#allocation2 + $0xa8] sm:$0xf] }
  0xc1   :  { %v229_v14 = vrot.slane %v228_v3, 2  ;;  %v251_v15 = vadd.f32 %v250_v4, %v248_v58  ;;  %v4232_v58 = vld [vmem:[#allocation2 + $0x1cc] sm:$0xf]  ;;  %789 = vmatpush.bf16.msrb.mxu0 %v3121_v57  ;;  %v4230_v4 = vld [vmem:[#allocation2 + $0x1b4] sm:$0xf0] }
  0xc2   :  { %v235_v20 = vrot.slane %v234_v8, 2  ;;  %v257_v21 = vadd.f32 %v256_v9, %v249_v63  ;;  %v212_v22 = vpop.f32.mrf.mxu2  ;;  %v3249_v61 = vor.u32 %v4232_v58, %v3246_v59  ;;  %v4198_v63 = vld [vmem:[#allocation2 + $0xb4] sm:$0xf0]  ;;  %v3229_v9 = vor.u32 %v4230_v4, %v3228_v0  ;;  %v3054_v57 = vld [vmem:[#allocation2 + $0x58] sm:$0xf0] }
  0xc3   :  { %v230_v26 = vadd.f32 %v229_v14, %v228_v3  ;;  %v252_v27 = vrot.slane %v251_v15, 2  ;;  %v225_v28 = vpop.f32.mrf.mxu3  ;;  %v3101_v3 = vor.u32 %v4198_v63, %v3100_v62  ;;  %v3085_v22 = vor.u32 %v4194_v17, %v3084_v13  ;;  %v4216_v58 = vld [vmem:[#allocation2 + $0x14c] sm:$0xf]  ;;  %v4182_v62 = vld [vmem:[#allocation2 + $0x34] sm:$0xf0] }
  0xc4   :  { %v236_v32 = vadd.f32 %v235_v20, %v234_v8  ;;  %v258_v33 = vrot.slane %v257_v21, 2  ;;  %802 = vmatpush.bf16.msrb.mxu1 %v3249_v61  ;;  %777 = vmatpush.bf16.msra.mxu3 %v3229_v9  ;;  %v3089_v28 = vor.u32 %v4192_v24, %v3086_v25  ;;  %v3036_v61 = vld [vmem:[#allocation2 + $0x28] sm:$0xf]  ;;  %v4210_v17 = vld [vmem:[#allocation2 + $0x114] sm:$0xf0] }
  0xc5   :  { %v231_v37 = vrot.slane %v230_v26, 1  ;;  %v253_v38 = vadd.f32 %v252_v27, %v251_v15  ;;  %764 = vmatpush.bf16.msra.mxu2 %v3101_v3  ;;  %790 = vmatpush.bf16.msrb.mxu0 %v3105_v16  ;;  %v3164_v0 = vld [vmem:[#allocation2 + $0x128] sm:$0xf]  ;;  %v4180_v3 = vld [vmem:[#allocation2 + $0x2c] sm:$0xf]  ;;  %v3037_v4 = vor.u32 %v4182_v62, %v3036_v61 }
  0xc6   :  { %v237_v43 = vrot.slane %v236_v32, 1  ;;  %v259_v44 = vadd.f32 %v258_v33, %v257_v21  ;;  %v3233_v21 = vor.u32 %v4228_v10, %v3230_v12  ;;  %v3020_v10 = vld [vmem:[#allocation2 + $0x8] sm:$0xf]  ;;  %v4178_v12 = vld [vmem:[#allocation2 + $0x14] sm:$0xf0] }
  0xc7   :  { %v232_v48 = vadd.f32 %v231_v37, %v230_v26  ;;  %v254_v50 = vrot.slane %v253_v38, 1  ;;  %v4224_v26 = vld [vmem:[#allocation2 + $0x18c] sm:$0xf]  ;;  %v3196_v37 = vld [vmem:[#allocation2 + $0x168] sm:$0xf] }
  0xc8   :  { %v238_v54 = vadd.f32 %v237_v43, %v236_v32  ;;  %v260_v56 = vrot.slane %v259_v44, 1  ;;  %803 = vmatpush.bf16.msrb.mxu1 %v3233_v21  ;;  %v3217_v31 = vor.u32 %v4224_v26, %v3214_v29  ;;  %v3068_v32 = vld [vmem:[#allocation2 + $0x68] sm:$0xf]  ;;  %778 = vmatpush.bf16.msra.mxu3 %v3213_v23  ;;  %v3070_v43 = vld [vmem:[#allocation2 + $0x78] sm:$0xf0]  ;;  %v3021_v23 = vor.u32 %v4178_v12, %v3020_v10 }
  0xc9   :  { %v4830_v11 = vmul.f32 %v4827_v42, %v232_v48  ;;  %v255_v60 = vadd.f32 %v254_v50, %v253_v38  ;;  %765 = vmatpush.bf16.msra.mxu2 %v3085_v22  ;;  %v3069_v36 = vor.u32 %v4190_v34, %v3068_v32  ;;  %v4222_v38 = vld [vmem:[#allocation2 + $0x174] sm:$0xf0]  ;;  %791 = vmatpush.bf16.msrb.mxu0 %v3089_v28  ;;  %v3148_v16 = vld [vmem:[#allocation2 + $0x108] sm:$0xf]  ;;  %v3022_v21 = vld [vmem:[#allocation2 + $0x18] sm:$0xf0] }
  0xca   :  { %v4833_v1 = vmul.f32 %v4827_v42, %v238_v54  ;;  %v261_v2 = vadd.f32 %v260_v56, %v259_v44  ;;  %v3197_v40 = vor.u32 %v4222_v38, %v3196_v37  ;;  %v3073_v44 = vor.u32 %v4188_v41, %v3070_v43  ;;  %v4186_v50 = vld [vmem:[#allocation2 + $0x54] sm:$0xf0]  ;;  %v4184_v56 = vld [vmem:[#allocation2 + $0x4c] sm:$0xf]  ;;  %v3150_v25 = vld [vmem:[#allocation2 + $0x118] sm:$0xf0] }
  0xcb   :  { %v262_v7 = vmul.f32 %v255_v60, %v4827_v42  ;;  %v264_v8 = vmul.f32 %v4830_v11, %v4830_v11  ;;  %v3201_v48 = vor.u32 %v4220_v45, %v3198_v46  ;;  %v3053_v53 = vor.u32 %v4186_v50, %v3052_v47  ;;  %v3182_v60 = vld [vmem:[#allocation2 + $0x158] sm:$0xf0]  ;;  %v4208_v24 = vld [vmem:[#allocation2 + $0x10c] sm:$0xf]  ;;  %v304_v37 = vld [vmem:[%s5197_s30] sm:$0x3] }
  0xcc   :  { %v263_v14 = vmul.f32 %v261_v2, %v4827_v42  ;;  %v265_v15 = vmul.f32 %v4833_v1, %v4833_v1  ;;  %804 = vmatpush.bf16.msrb.mxu1 %v3217_v31  ;;  %779 = vmatpush.bf16.msra.mxu3 %v3197_v40  ;;  %v3181_v54 = vor.u32 %v4218_v52, %v3180_v51  ;;  %v4214_v2 = vld [vmem:[#allocation2 + $0x134] sm:$0xf0]  ;;  %v306_v47 = vperm.slane %v304_v37, 0  ;;  %v3324_v61 = vld [vmem:[#allocation4 + $0x70] sm:$0xf] }
  0xcd   :  { %v266_v20 = vsub.f32 %v262_v7, %v264_v8  ;;  %766 = vmatpush.bf16.msra.mxu2 %v3069_v36  ;;  %792 = vmatpush.bf16.msrb.mxu0 %v3073_v44  ;;  %v3057_v59 = vor.u32 %v4184_v56, %v3054_v57  ;;  %v3185_v63 = vor.u32 %v4216_v58, %v3182_v60  ;;  %v3166_v7 = vld [vmem:[#allocation2 + $0x138] sm:$0xf0]  ;;  %v307_v50 = vperm.slane %v304_v37, 1  ;;  %v3380_v58 = vld [vmem:[#allocation4 + $0xe0] sm:$0xf] }
  0xce   :  { %v267_v27 = vsub.f32 %v263_v14, %v265_v15  ;;  %v3165_v9 = vor.u32 %v4214_v2, %v3164_v0  ;;  %v3041_v15 = vor.u32 %v4180_v3, %v3038_v5  ;;  %v3169_v19 = vor.u32 %v4212_v6, %v3166_v7  ;;  %v4254_v62 = vld [vmem:[#allocation4 + $0x74] sm:$0xf0]  ;;  %v3372_v0 = vld [vmem:[#allocation4 + $0xd0] sm:$0xf]  ;;  %v4252_v5 = vld [vmem:[#allocation4 + $0x64] sm:$0xf0] }
  0xcf   :  { %v268_v30 = vmax.f32 %v266_v20, 0.0  ;;  %v4176_v20 = vld [vmem:[#allocation2 + $0xc] sm:$0xf]  ;;  %v3153_v31 = vor.u32 %v4208_v24, %v3150_v25  ;;  %v270_v38 = vsub.f32 %v4809_v49, %v4830_v11  ;;  %v271_v44 = vsub.f32 %v4811_v55, %v4833_v1  ;;  %v3388_v55 = vld [vmem:[#allocation4 + $0xf0] sm:$0xf] }
  0xd0   :  { %v269_v33 = vmax.f32 %v267_v27, 0.0  ;;  %805 = vmatpush.bf16.msrb.mxu1 %v3201_v48  ;;  %780 = vmatpush.bf16.msra.mxu3 %v3181_v54  ;;  %v3149_v27 = vor.u32 %v4210_v17, %v3148_v16  ;;  %v3025_v29 = vor.u32 %v4176_v20, %v3022_v21  ;;  %v4270_v1 = vld [vmem:[#allocation4 + $0xf4] sm:$0xf0]  ;;  %v3364_v7 = vld [vmem:[#allocation4 + $0xc0] sm:$0xf] }
  0xd1   :  { %v4841_v35 = vadd.f32 1e-05, %v268_v30  ;;  %767 = vmatpush.bf16.msra.mxu2 %v3053_v53  ;;  %793 = vmatpush.bf16.msrb.mxu0 %v3057_v59  ;;  %v3389_v57 = vor.u32 %v4270_v1, %v3388_v55  ;;  %v4268_v59 = vld [vmem:[#allocation4 + $0xe4] sm:$0xf0]  ;;  %v4266_v2 = vld [vmem:[#allocation4 + $0xd4] sm:$0xf0] }
  0xd2   :  { %v4843_v39 = vadd.f32 1e-05, %v269_v33  ;;  %v296_v33 = vld [vmem:[%s5196_s10] sm:$0x3]  ;;  %v3381_v60 = vor.u32 %v4268_v59, %v3380_v58  ;;  %v3373_v3 = vor.u32 %v4266_v2, %v3372_v0  ;;  %v3308_v10 = vld [vmem:[#allocation4 + $0x50] sm:$0xf] }
  0xd3   :  { %4478 = vrsqrt.f32 %v4841_v35  ;;  %vm280_vm4 = vweird.f32 %v4841_v35  ;;  %v298_v41 = vperm.slane %v296_v33, 0  ;;  %v4250_v12 = vld [vmem:[#allocation4 + $0x54] sm:$0xf0]  ;;  %v3516_v17 = vld [vmem:[#allocation4 + $0x1f0] sm:$0xf] }
  0xd4   :  { %4480 = vrsqrt.f32 %v4843_v39  ;;  %806 = vmatpush.bf16.msrb.mxu1 %v3185_v63  ;;  %781 = vmatpush.bf16.msra.mxu3 %v3165_v9  ;;  %vm290_vm6 = vweird.f32 %v4843_v39  ;;  %v3325_v63 = vor.u32 %v4254_v62, %v3324_v61  ;;  %v4262_v16 = vld [vmem:[#allocation4 + $0xb4] sm:$0xf0]  ;;  %v3300_v21 = vld [vmem:[#allocation4 + $0x40] sm:$0xf]  ;;  %v4296_v0 = vld [vmem:[#allocation4 + $0x1c4] sm:$0xf0] }
  0xd5   :  { %768 = vmatpush.bf16.msra.mxu2 %v3037_v4  ;;  %794 = vmatpush.bf16.msrb.mxu0 %v3041_v15  ;;  %v3316_v4 = vld [vmem:[#allocation4 + $0x60] sm:$0xf]  ;;  %v3356_v15 = vld [vmem:[#allocation4 + $0xb0] sm:$0xf]  ;;  %v4269_v2 = vld [vmem:[#allocation4 + $0xf4] sm:$0xf] }
  0xd6   :  { %v3317_v6 = vor.u32 %v4252_v5, %v3316_v4  ;;  %v3348_v25 = vld [vmem:[#allocation4 + $0xa0] sm:$0xf]  ;;  %v3390_v5 = vld [vmem:[#allocation4 + $0xf8] sm:$0xf0] }
  0xd7   :  { %v3332_v1 = vld [vmem:[#allocation4 + $0x80] sm:$0xf] }
  0xd8   :  { %807 = vmatpush.bf16.msrb.mxu1 %v3169_v19  ;;  %782 = vmatpush.bf16.msra.mxu3 %v3149_v27  ;;  %v4302_v19 = vld [vmem:[#allocation4 + $0x1f4] sm:$0xf0]  ;;  %v3508_v27 = vld [vmem:[#allocation4 + $0x1e0] sm:$0xf] }
  0xd9   :  { %v4479_v8 = vpop.eup %4478  ;;  %769 = vmatpush.bf16.msra.mxu2 %v3021_v23  ;;  %795 = vmatpush.bf16.msrb.mxu0 %v3025_v29  ;;  %v3517_v20 = vor.u32 %v4302_v19, %v3516_v17  ;;  %v4300_v29 = vld [vmem:[#allocation4 + $0x1e4] sm:$0xf0]  ;;  %v3492_v58 = vld [vmem:[#allocation4 + $0x1c0] sm:$0xf] }
  0xda   :  { %v4481_v13 = vpop.eup %4480  ;;  %v275_v14 = vmul.f32 %v4479_v8, %v4841_v35  ;;  %vm281_vm2 = vweird.f32 %v4479_v8  ;;  %v299_v35 = vperm.slane %v296_v33, 1  ;;  %v4246_v33 = vld [vmem:[#allocation4 + $0x34] sm:$0xf0]  ;;  %v3493_v4 = vor.u32 %v4296_v0, %v3492_v58  ;;  %v3318_v0 = vld [vmem:[#allocation4 + $0x68] sm:$0xf0] }
  0xdb   :  { %v285_v18 = vmul.f32 %v4481_v13, %v4843_v39  ;;  %vm291_vm3 = vweird.f32 %v4481_v13  ;;  %vm282_vm5 = vmor %vm280_vm4, %vm281_vm2 }
  0xdc   :  { %v276_v22 = vmul.f32 %v4479_v8, %v275_v14  ;;  %808 = vmatpush.bf16.msrb.mxu1 %v3153_v31  ;;  %vm292_vm7 = vmor %vm290_vm6, %vm291_vm3  ;;  %v3309_v14 = vor.u32 %v4250_v12, %v3308_v10  ;;  %v3509_v31 = vor.u32 %v4300_v29, %v3508_v27  ;;  %v3382_v27 = vld [vmem:[#allocation4 + $0xe8] sm:$0xf0] }
  0xdd   :  { %v286_v26 = vmul.f32 %v4481_v13, %v285_v18  ;;  %v3357_v18 = vor.u32 %v4262_v16, %v3356_v15  ;;  %v3436_v15 = vld [vmem:[#allocation4 + $0x150] sm:$0xf]  ;;  %v4282_v16 = vld [vmem:[#allocation4 + $0x154] sm:$0xf0] }
  0xde   :  { %v277_v28 = vmul.f32 0.5, %v276_v22  ;;  %v4248_v22 = vld [vmem:[#allocation4 + $0x44] sm:$0xf0]  ;;  %v3437_v19 = vor.u32 %v4282_v16, %v3436_v15  ;;  %v3366_v15 = vld [vmem:[#allocation4 + $0xc8] sm:$0xf0] }
  0xdf   :  { %v287_v30 = vmul.f32 0.5, %v286_v26  ;;  %v3301_v24 = vor.u32 %v4248_v22, %v3300_v21  ;;  %v4260_v26 = vld [vmem:[#allocation4 + $0xa4] sm:$0xf0]  ;;  %v4294_v21 = vld [vmem:[#allocation4 + $0x1b4] sm:$0xf0] }
  0xe0   :  { %v278_v32 = vsub.f32 1.5, %v277_v28  ;;  %v3349_v28 = vor.u32 %v4260_v26, %v3348_v25  ;;  %v4267_v26 = vld [vmem:[#allocation4 + $0xe4] sm:$0xf] }
  0xe1   :  { %v288_v34 = vsub.f32 1.5, %v287_v30  ;;  %v3385_v29 = vor.u32 %v4267_v26, %v3382_v27  ;;  %v3310_v26 = vld [vmem:[#allocation4 + $0x58] sm:$0xf0] }
  0xe2   :  { %v279_v36 = vmul.f32 %v4479_v8, %v278_v32  ;;  %v3292_v32 = vld [vmem:[#allocation4 + $0x30] sm:$0xf] }
  0xe3   :  { %v289_v40 = vmul.f32 %v4481_v13, %v288_v34  ;;  %v3452_v34 = vld [vmem:[#allocation4 + $0x170] sm:$0xf] }
  0xe4   :  { %v283_v43 = vsel %vm282_vm5, %v4479_v8, %v279_v36  ;;  %v4264_v8 = vld [vmem:[#allocation4 + $0xc4] sm:$0xf0] }
  0xe5   :  { %v294_v45 = vmul.f32 %v283_v43, %v270_v38  ;;  %v293_v46 = vsel %vm292_vm7, %v4481_v13, %v289_v40  ;;  %v3365_v9 = vor.u32 %v4264_v8, %v3364_v7  ;;  %v4864_v13 = vld [vmem:[%s5198_s1] sm:$0xf]  ;;  %v3293_v38 = vor.u32 %v4246_v33, %v3292_v32  ;;  %v4286_v40 = vld [vmem:[#allocation4 + $0x174] sm:$0xf0]  ;;  %v3340_v43 = vld [vmem:[#allocation4 + $0x90] sm:$0xf] }
  0xe6   :  { %v295_v48 = vmul.f32 %v293_v46, %v271_v44  ;;  %v383_v23 = vperm.slane %v4864_v13, 1  ;;  %v4258_v44 = vld [vmem:[#allocation4 + $0x94] sm:$0xf0]  ;;  %v382_v46 = vperm.slane %v4864_v13, 0  ;;  %v385_v17 = vperm.slane %v4864_v13, 3 }
  0xe7   :  { %v302_v51 = vmul.f32 %v298_v41, %v294_v45  ;;  %v3453_v41 = vor.u32 %v4286_v40, %v3452_v34  ;;  %v4242_v7 = vld [vmem:[#allocation4 + $0x14] sm:$0xf0]  ;;  %v3428_v32 = vld [vmem:[#allocation4 + $0x140] sm:$0xf]  ;;  %v4253_v40 = vld [vmem:[#allocation4 + $0x74] sm:$0xf] }
  0xe8   :  { %v303_v52 = vmul.f32 %v299_v35, %v295_v48  ;;  %v3500_v35 = vld [vmem:[#allocation4 + $0x1d0] sm:$0xf]  ;;  %v4298_v48 = vld [vmem:[#allocation4 + $0x1d4] sm:$0xf0] }
  0xe9   :  { %v310_v49 = vadd.f32 %v306_v47, %v302_v51  ;;  %v3341_v47 = vor.u32 %v4258_v44, %v3340_v43  ;;  %v3284_v51 = vld [vmem:[#allocation4 + $0x20] sm:$0xf] }
  0xea   :  { %v311_v11 = vadd.f32 %v307_v50, %v303_v52  ;;  %v3501_v50 = vor.u32 %v4298_v48, %v3500_v35  ;;  %v4244_v52 = vld [vmem:[#allocation4 + $0x24] sm:$0xf0]  ;;  %v3326_v35 = vld [vmem:[#allocation4 + $0x78] sm:$0xf0] }
  0xeb   :  { %v312_v53 = vmax.f32 %v310_v49, 0.0  ;;  %v3444_v49 = vld [vmem:[#allocation4 + $0x160] sm:$0xf] }
  0xec   :  { %v313_v54 = vmax.f32 %v311_v11, 0.0 }
  0xed   :  { %v314_v39 = vpack.c.bf16 %v312_v53, %v312_v53 }
  0xee   :  { %v315_v56 = vpack.c.bf16 %v313_v54, %v313_v54  ;;  %v3285_v54 = vor.u32 %v4244_v52, %v3284_v51 }
  0xef   :  { %718 = vmatmul.bf16.vlgmr.msrb.gmra.mxu2 %v314_v39  ;;  %744 = vmatmul.bf16.vlgmr.msra.gmra.mxu0 %v314_v39 }
  0xf0   :  { %731 = vmatmul.bf16.vlgmr.msrb.gmra.mxu3 %v315_v56  ;;  %757 = vmatmul.bf16.vlgmr.msra.gmra.mxu1 %v315_v56 }
  0xf1   :  { %1377 = vmatpush.bf16.msrb.mxu3 %v3389_v57  ;;  %1364 = vmatpush.bf16.msrb.mxu2 %v3325_v63  ;;  %v4256_v57 = vld [vmem:[#allocation4 + $0x84] sm:$0xf0] }
  0xf2   :  { %1403 = vmatpush.bf16.msra.mxu1 %v3517_v20  ;;  %1390 = vmatpush.bf16.msra.mxu0 %v3453_v41  ;;  %v3333_v63 = vor.u32 %v4256_v57, %v3332_v1  ;;  %v3484_v20 = vld [vmem:[#allocation4 + $0x1b0] sm:$0xf]  ;;  %v4278_v57 = vld [vmem:[#allocation4 + $0x134] sm:$0xf0] }
  0xf3   :  { %v3420_v1 = vld [vmem:[#allocation4 + $0x130] sm:$0xf] }
  0xf5   :  { %1378 = vmatpush.bf16.msrb.mxu3 %v3381_v60  ;;  %1365 = vmatpush.bf16.msrb.mxu2 %v3317_v6  ;;  %v3276_v6 = vld [vmem:[#allocation4 + $0x10] sm:$0xf] }
  0xf6   :  { %1404 = vmatpush.bf16.msra.mxu1 %v3509_v31  ;;  %v4240_v31 = vld [vmem:[#allocation4 + $0x4] sm:$0xf0] }
  0xf9   :  { %1379 = vmatpush.bf16.msrb.mxu3 %v3373_v3  ;;  %1366 = vmatpush.bf16.msrb.mxu2 %v3309_v14  ;;  %v3393_v14 = vor.u32 %v4269_v2, %v3390_v5  ;;  %v3468_v5 = vld [vmem:[#allocation4 + $0x190] sm:$0xf] }
  0xfa   :  { %1405 = vmatpush.bf16.msra.mxu1 %v3501_v50 }
  0xfd   :  { %1380 = vmatpush.bf16.msrb.mxu3 %v3365_v9  ;;  %1367 = vmatpush.bf16.msrb.mxu2 %v3301_v24 }
  0xfe   :  { %1406 = vmatpush.bf16.msra.mxu1 %v3493_v4 }
  0xff   :  { %770 = vmatmul.bf16.vlgmr.msra.gmra.mxu2 %v314_v39  ;;  %796 = vmatmul.bf16.vlgmr.msrb.gmra.mxu0 %v314_v39  ;;  %v4284_v39 = vld [vmem:[#allocation4 + $0x164] sm:$0xf0] }
 0x100   :  { %783 = vmatmul.bf16.vlgmr.msra.gmra.mxu3 %v315_v56  ;;  %809 = vmatmul.bf16.vlgmr.msrb.gmra.mxu1 %v315_v56  ;;  %v3445_v55 = vor.u32 %v4284_v39, %v3444_v49  ;;  %v3329_v39 = vor.u32 %v4253_v40, %v3326_v35  ;;  %v4261_v40 = vld [vmem:[#allocation4 + $0xb4] sm:$0xf] }
 0x101   :  { %1381 = vmatpush.bf16.msrb.mxu3 %v3357_v18  ;;  %1368 = vmatpush.bf16.msrb.mxu2 %v3293_v38  ;;  %v3277_v18 = vor.u32 %v4242_v7, %v3276_v6  ;;  %v4280_v38 = vld [vmem:[#allocation4 + $0x144] sm:$0xf0]  ;;  %v4290_v6 = vld [vmem:[#allocation4 + $0x194] sm:$0xf0] }
 0x102   :  { %1391 = vmatpush.bf16.msra.mxu0 %v3445_v55  ;;  %v3429_v44 = vor.u32 %v4280_v38, %v3428_v32  ;;  %v4288_v32 = vld [vmem:[#allocation4 + $0x184] sm:$0xf0] }
 0x105   :  { %1382 = vmatpush.bf16.msrb.mxu3 %v3349_v28  ;;  %1369 = vmatpush.bf16.msrb.mxu2 %v3285_v54  ;;  %v3485_v28 = vor.u32 %v4294_v21, %v3484_v20  ;;  %v3412_v20 = vld [vmem:[#allocation4 + $0x120] sm:$0xf]  ;;  %v4276_v21 = vld [vmem:[#allocation4 + $0x124] sm:$0xf0] }
 0x106   :  { %1392 = vmatpush.bf16.msra.mxu0 %v3437_v19 }
 0x107   :  { %1407 = vmatpush.bf16.msra.mxu1 %v3485_v28 }
 0x109   :  { %1383 = vmatpush.bf16.msrb.mxu3 %v3341_v47  ;;  %1370 = vmatpush.bf16.msrb.mxu2 %v3277_v18  ;;  %v4292_v47 = vld [vmem:[#allocation4 + $0x1a4] sm:$0xf0] }
 0x10a   :  { %1393 = vmatpush.bf16.msra.mxu0 %v3429_v44 }
 0x10d   :  { %1384 = vmatpush.bf16.msrb.mxu3 %v3333_v63  ;;  %v4251_v63 = vld [vmem:[#allocation4 + $0x64] sm:$0xf] }
 0x10e   :  { %v3321_v4 = vor.u32 %v4251_v63, %v3318_v0  ;;  %v3350_v63 = vld [vmem:[#allocation4 + $0xa8] sm:$0xf0] }
 0x111   :  { %1429 = vmatpush.bf16.msra.mxu3 %v3393_v14  ;;  %v4263_v14 = vld [vmem:[#allocation4 + $0xc4] sm:$0xf] }
 0x112   :  { %v3369_v19 = vor.u32 %v4263_v14, %v3366_v15  ;;  %v3396_v14 = vld [vmem:[#allocation4 + $0x100] sm:$0xf]  ;;  %v4272_v15 = vld [vmem:[#allocation4 + $0x104] sm:$0xf0] }
 0x115   :  { %1430 = vmatpush.bf16.msra.mxu3 %v3385_v29 }
 0x16c   :  { %v745_v30 = vpop.f32.mrf.mxu0 }
 0x16d   :  { %v746_v36 = vadd.f32 %v745_v30, %v383_v23  ;;  %v758_v37 = vpop.f32.mrf.mxu1  ;;  %v3268_v30 = vld [vmem:[#allocation4] sm:$0xf] }
 0x16e   :  { %v3269_v43 = vor.u32 %v4240_v31, %v3268_v30  ;;  %v3460_v31 = vld [vmem:[#allocation4 + $0x180] sm:$0xf] }
 0x16f   :  { %v4867_v45 = vadd.f32 %v758_v37, %v746_v36  ;;  %v3461_v38 = vor.u32 %v4288_v32, %v3460_v31  ;;  %v3454_v31 = vld [vmem:[#allocation4 + $0x178] sm:$0xf0] }
 0x170   :  { %1371 = vmatpush.bf16.msrb.mxu2 %v3269_v43 }
 0x171   :  { %v820_v11 = vrot.slane %v4867_v45, 4  ;;  %v843_v53 = vmul.f32 %v4867_v45, %v4867_v45 }
 0x172   :  { %v719_v56 = vpop.f32.mrf.mxu2 }
 0x173   :  { %v821_v59 = vadd.f32 %v820_v11, %v4867_v45  ;;  %v852_v60 = vrot.slane %v843_v53, 4  ;;  %v720_v61 = vadd.f32 %v719_v56, %v382_v46  ;;  %v732_v62 = vpop.f32.mrf.mxu3  ;;  %v3476_v46 = vld [vmem:[#allocation4 + $0x1a0] sm:$0xf]  ;;  %v4265_v11 = vld [vmem:[#allocation4 + $0xd4] sm:$0xf] }
 0x174   :  { %v747_v3 = vpop.f32.mrf.mxu0  ;;  %v3477_v56 = vor.u32 %v4292_v47, %v3476_v46  ;;  %1416 = vmatpush.bf16.msra.mxu2 %v3329_v39 }
 0x175   :  { %v822_v8 = vrot.slane %v821_v59, 2  ;;  %v853_v9 = vadd.f32 %v852_v60, %v843_v53  ;;  %v4874_v10 = vadd.f32 %v732_v62, %v720_v61  ;;  %v760_v12 = vpop.f32.mrf.mxu1  ;;  %v3374_v53 = vld [vmem:[#allocation4 + $0xd8] sm:$0xf0]  ;;  %v3421_v3 = vor.u32 %v4278_v57, %v3420_v1  ;;  %v4247_v57 = vld [vmem:[#allocation4 + $0x44] sm:$0xf] }
 0x176   :  { %v3377_v55 = vor.u32 %v4265_v11, %v3374_v53  ;;  %1408 = vmatpush.bf16.msra.mxu1 %v3477_v56  ;;  %v384_v12 = vperm.slane %v4864_v13, 2  ;;  %v3404_v53 = vld [vmem:[#allocation4 + $0x110] sm:$0xf] }
 0x177   :  { %v823_v22 = vadd.f32 %v822_v8, %v821_v59  ;;  %v854_v23 = vrot.slane %v853_v9, 2  ;;  %v814_v24 = vrot.slane %v4874_v10, 4  ;;  %v842_v25 = vmul.f32 %v4874_v10, %v4874_v10  ;;  %1394 = vmatpush.bf16.msra.mxu0 %v3421_v3 }
 0x178   :  { %1431 = vmatpush.bf16.msra.mxu3 %v3377_v55  ;;  %1417 = vmatpush.bf16.msra.mxu2 %v3321_v4 }
 0x179   :  { %v824_v33 = vrot.slane %v823_v22, 1  ;;  %v855_v34 = vadd.f32 %v854_v23, %v853_v9  ;;  %v815_v36 = vadd.f32 %v814_v24, %v4874_v10  ;;  %v846_v37 = vrot.slane %v842_v25, 4 }
 0x17a   :  { %v721_v41 = vpop.f32.mrf.mxu2  ;;  %v3413_v24 = vor.u32 %v4276_v21, %v3412_v20 }
 0x17b   :  { %v825_v48 = vadd.f32 %v824_v33, %v823_v22  ;;  %v856_v50 = vrot.slane %v855_v34, 1  ;;  %v816_v51 = vrot.slane %v815_v36, 2  ;;  %v847_v52 = vadd.f32 %v846_v37, %v842_v25  ;;  %v734_v49 = vpop.f32.mrf.mxu3  ;;  %v4249_v25 = vld [vmem:[#allocation4 + $0x54] sm:$0xf]  ;;  %v3358_v41 = vld [vmem:[#allocation4 + $0xb8] sm:$0xf0] }
 0x17c   :  { %v797_v54 = vpop.f32.mrf.mxu0  ;;  %v3313_v30 = vor.u32 %v4249_v25, %v3310_v26  ;;  %1432 = vmatpush.bf16.msra.mxu3 %v3369_v19  ;;  %1395 = vmatpush.bf16.msra.mxu0 %v3413_v24  ;;  %v3361_v47 = vor.u32 %v4261_v40, %v3358_v41  ;;  %v4257_v40 = vld [vmem:[#allocation4 + $0x94] sm:$0xf]  ;;  %v3342_v41 = vld [vmem:[#allocation4 + $0x98] sm:$0xf0] }
 0x17d   :  { %v4882_v58 = vmul.f32 %v825_v48, %v4827_v42  ;;  %v857_v59 = vadd.f32 %v856_v50, %v855_v34  ;;  %v817_v60 = vadd.f32 %v816_v51, %v815_v36  ;;  %v848_v61 = vrot.slane %v847_v52, 2  ;;  %v810_v62 = vpop.f32.mrf.mxu1  ;;  %v4301_v48 = vld [vmem:[#allocation4 + $0x1f4] sm:$0xf]  ;;  %v3518_v50 = vld [vmem:[#allocation4 + $0x1f8] sm:$0xf0] }
 0x17e   :  { %v798_v2 = vadd.f32 %v797_v54, %v385_v17  ;;  %v3469_v17 = vor.u32 %v4290_v6, %v3468_v5  ;;  %v4274_v54 = vld [vmem:[#allocation4 + $0x114] sm:$0xf0]  ;;  %1418 = vmatpush.bf16.msra.mxu2 %v3313_v30  ;;  %v3521_v1 = vor.u32 %v4301_v48, %v3518_v50  ;;  %v4299_v5 = vld [vmem:[#allocation4 + $0x1e4] sm:$0xf]  ;;  %v3510_v6 = vld [vmem:[#allocation4 + $0x1e8] sm:$0xf0]  ;;  %v3397_v30 = vor.u32 %v4272_v15, %v3396_v14 }
 0x17f   :  { %v871_v7 = vmul.f32 %v857_v59, %v4827_v42  ;;  %v875_v8 = vmul.f32 %v4882_v58, %v4882_v58  ;;  %v818_v9 = vrot.slane %v817_v60, 1  ;;  %v849_v16 = vadd.f32 %v848_v61, %v847_v52  ;;  %v3302_v59 = vld [vmem:[#allocation4 + $0x48] sm:$0xf0] }
 0x180   :  { %v4888_v18 = vadd.f32 %v810_v62, %v798_v2  ;;  %1409 = vmatpush.bf16.msra.mxu1 %v3469_v17  ;;  %1433 = vmatpush.bf16.msra.mxu3 %v3361_v47  ;;  %v4259_v62 = vld [vmem:[#allocation4 + $0xa4] sm:$0xf]  ;;  %v3405_v4 = vor.u32 %v4274_v54, %v3404_v53  ;;  %v3513_v21 = vor.u32 %v4299_v5, %v3510_v6 }
 0x181   :  { %v879_v22 = vsub.f32 %v871_v7, %v875_v8  ;;  %v819_v23 = vadd.f32 %v818_v9, %v817_v60  ;;  %v850_v27 = vrot.slane %v849_v16, 1  ;;  %v3305_v9 = vor.u32 %v4247_v57, %v3302_v59  ;;  %v4283_v53 = vld [vmem:[#allocation4 + $0x164] sm:$0xf]  ;;  %v3446_v57 = vld [vmem:[#allocation4 + $0x168] sm:$0xf0] }
 0x182   :  { %v832_v28 = vrot.slane %v4888_v18, 4  ;;  %v845_v13 = vmul.f32 %v4888_v18, %v4888_v18  ;;  %v771_v29 = vpop.f32.mrf.mxu2  ;;  %1396 = vmatpush.bf16.msra.mxu0 %v3405_v4  ;;  %v4255_v59 = vld [vmem:[#allocation4 + $0x84] sm:$0xf]  ;;  %v3449_v6 = vor.u32 %v4283_v53, %v3446_v57  ;;  %v4277_v53 = vld [vmem:[#allocation4 + $0x134] sm:$0xf] }
 0x183   :  { %v883_v33 = vmax.f32 %v879_v22, 0.0  ;;  %v4894_v34 = vmul.f32 %v819_v23, %v4827_v42  ;;  %v772_v36 = vadd.f32 %v771_v29, %v384_v12  ;;  %v784_v37 = vpop.f32.mrf.mxu3  ;;  %v851_v43 = vadd.f32 %v850_v27, %v849_v16  ;;  %v4245_v22 = vld [vmem:[#allocation4 + $0x34] sm:$0xf]  ;;  %v3294_v23 = vld [vmem:[#allocation4 + $0x38] sm:$0xf0]  ;;  %1419 = vmatpush.bf16.msra.mxu2 %v3305_v9 }
 0x184   :  { %v833_v44 = vadd.f32 %v832_v28, %v4888_v18  ;;  %v864_v35 = vrot.slane %v845_v13, 4  ;;  %v799_v46 = vpop.f32.mrf.mxu0  ;;  %1410 = vmatpush.bf16.msra.mxu1 %v3461_v38  ;;  %v3353_v12 = vor.u32 %v4259_v62, %v3350_v63  ;;  %v4285_v27 = vld [vmem:[#allocation4 + $0x174] sm:$0xf] }
 0x185   :  { %v4897_v51 = vadd.f32 1e-05, %v883_v33  ;;  %v874_v52 = vmul.f32 %v4894_v34, %v4894_v34  ;;  %v4901_v49 = vadd.f32 %v784_v37, %v772_v36  ;;  %v812_v11 = vpop.f32.mrf.mxu1  ;;  %v870_v39 = vmul.f32 %v851_v43, %v4827_v42  ;;  %v4243_v46 = vld [vmem:[#allocation4 + $0x24] sm:$0xf]  ;;  %v4281_v9 = vld [vmem:[#allocation4 + $0x154] sm:$0xf] }
 0x186   :  { %v834_v56 = vrot.slane %v833_v44, 2  ;;  %v865_v55 = vadd.f32 %v864_v35, %v845_v13  ;;  %1434 = vmatpush.bf16.msra.mxu3 %v3353_v12  ;;  %v3297_v37 = vor.u32 %v4245_v22, %v3294_v23  ;;  %v3457_v38 = vor.u32 %v4285_v27, %v3454_v31  ;;  %1397 = vmatpush.bf16.msra.mxu0 %v3397_v30  ;;  %v3502_v35 = vld [vmem:[#allocation4 + $0x1d8] sm:$0xf0]  ;;  %v3286_v11 = vld [vmem:[#allocation4 + $0x28] sm:$0xf0] }
 0x187   :  { %4482 = vrsqrt.f32 %v4897_v51  ;;  %v826_v60 = vrot.slane %v4901_v49, 4  ;;  %v844_v61 = vmul.f32 %v4901_v49, %v4901_v49  ;;  %v878_v0 = vsub.f32 %v870_v39, %v874_v52  ;;  %v4923_v39 = vld [vmem:[%s5199_s28] sm:$0xf]  ;;  %v4293_v23 = vld [vmem:[#allocation4 + $0x1b4] sm:$0xf] }
 0x188   :  { %v835_v2 = vadd.f32 %v834_v56, %v833_v44  ;;  %v866_v3 = vrot.slane %v865_v55, 2  ;;  %1455 = vmatpush.bf16.msrb.mxu1 %v3521_v1  ;;  %v4297_v44 = vld [vmem:[#allocation4 + $0x1d4] sm:$0xf]  ;;  %1420 = vmatpush.bf16.msra.mxu2 %v3297_v37  ;;  %v3345_v56 = vor.u32 %v4257_v40, %v3342_v41  ;;  %v3289_v1 = vor.u32 %v4243_v46, %v3286_v11  ;;  %v3270_v30 = vld [vmem:[#allocation4 + $0x8] sm:$0xf0] }
 0x189   :  { %v827_v7 = vadd.f32 %v826_v60, %v4901_v49  ;;  %v858_v8 = vrot.slane %v844_v61, 4  ;;  %v882_v16 = vmax.f32 %v878_v0, 0.0  ;;  %v3334_v60 = vld [vmem:[#allocation4 + $0x88] sm:$0xf0]  ;;  %v4295_v0 = vld [vmem:[#allocation4 + $0x1c4] sm:$0xf]  ;;  %v887_v31 = vsub.f32 %v4867_v45, %v4882_v58 }
 0x18a   :  { %v836_v17 = vrot.slane %v835_v2, 1  ;;  %v867_v19 = vadd.f32 %v866_v3, %v865_v55  ;;  %v773_v20 = vpop.f32.mrf.mxu2  ;;  %1442 = vmatpush.bf16.msrb.mxu0 %v3457_v38  ;;  %v3505_v55 = vor.u32 %v4297_v44, %v3502_v35  ;;  %v4241_v3 = vld [vmem:[#allocation4 + $0x14] sm:$0xf]  ;;  %1435 = vmatpush.bf16.msra.mxu3 %v3345_v56  ;;  %vm910_vm9 = vweird.f32 %v4897_v51  ;;  %v4947_v37 = vld [vmem:[%s5165_s9] sm:$0xf] }
 0x18b   :  { %v828_v24 = vrot.slane %v827_v7, 2  ;;  %v859_v25 = vadd.f32 %v858_v8, %v844_v61  ;;  %v786_v26 = vpop.f32.mrf.mxu3  ;;  %v4909_v28 = vadd.f32 1e-05, %v882_v16  ;;  %v3278_v8 = vld [vmem:[#allocation4 + $0x18] sm:$0xf0]  ;;  %v955_v11 = vperm.slane %v4947_v37, 1 }
 0x18c   :  { %v837_v13 = vadd.f32 %v836_v17, %v835_v2  ;;  %v868_v29 = vrot.slane %v867_v19, 1  ;;  %1456 = vmatpush.bf16.msrb.mxu1 %v3513_v21  ;;  %v3494_v2 = vld [vmem:[#allocation4 + $0x1c8] sm:$0xf0]  ;;  %1421 = vmatpush.bf16.msra.mxu2 %v3289_v1  ;;  %v3281_v16 = vor.u32 %v4241_v3, %v3278_v8  ;;  %v3438_v17 = vld [vmem:[#allocation4 + $0x158] sm:$0xf0]  ;;  %v886_v3 = vsub.f32 %v4874_v10, %v4894_v34 }
 0x18d   :  { %v4911_v32 = vpop.eup %4482  ;;  %v829_v33 = vadd.f32 %v828_v24, %v827_v7  ;;  %v860_v36 = vrot.slane %v859_v25, 2  ;;  %4484 = vrsqrt.f32 %v4909_v28  ;;  %v3337_v7 = vor.u32 %v4255_v59, %v3334_v60  ;;  %v3486_v24 = vld [vmem:[#allocation4 + $0x1b8] sm:$0xf0]  ;;  %v4279_v38 = vld [vmem:[#allocation4 + $0x144] sm:$0xf] }
 0x18e   :  { %v905_v43 = vmul.f32 %v4911_v32, %v4897_v51  ;;  %v4917_v47 = vmul.f32 %v837_v13, %v4827_v42  ;;  %v869_v48 = vadd.f32 %v868_v29, %v867_v19  ;;  %v3497_v15 = vor.u32 %v4295_v0, %v3494_v2  ;;  %1443 = vmatpush.bf16.msrb.mxu0 %v3449_v6  ;;  %v4239_v29 = vld [vmem:[#allocation4 + $0x4] sm:$0xf]  ;;  %v3430_v40 = vld [vmem:[#allocation4 + $0x148] sm:$0xf0]  ;;  %v3470_v59 = vld [vmem:[#allocation4 + $0x198] sm:$0xf0] }
 0x18f   :  { %v830_v50 = vrot.slane %v829_v33, 1  ;;  %v861_v52 = vadd.f32 %v860_v36, %v859_v25  ;;  %vm911_vm8 = vweird.f32 %v4911_v32  ;;  %v3441_v22 = vor.u32 %v4281_v9, %v3438_v17  ;;  %1436 = vmatpush.bf16.msra.mxu3 %v3337_v7  ;;  %v3478_v44 = vld [vmem:[#allocation4 + $0x1a8] sm:$0xf0]  ;;  %v4275_v0 = vld [vmem:[#allocation4 + $0x124] sm:$0xf] }
 0x190   :  { %v906_v54 = vmul.f32 %v4911_v32, %v905_v43  ;;  %v873_v61 = vmul.f32 %v869_v48, %v4827_v42  ;;  %v877_v62 = vmul.f32 %v4917_v47, %v4917_v47  ;;  %1457 = vmatpush.bf16.msrb.mxu1 %v3505_v55  ;;  %v941_v13 = vperm.slane %v4923_v39, 1  ;;  %vm912_vm10 = vmor %vm910_vm9, %vm911_vm8  ;;  %1422 = vmatpush.bf16.msra.mxu2 %v3281_v16  ;;  %v4291_v43 = vld [vmem:[#allocation4 + $0x1a4] sm:$0xf]  ;;  %v3414_v2 = vld [vmem:[#allocation4 + $0x128] sm:$0xf0] }
 0x191   :  { %v831_v63 = vadd.f32 %v830_v50, %v829_v33  ;;  %v862_v5 = vrot.slane %v861_v52, 1  ;;  %v3489_v51 = vor.u32 %v4293_v23, %v3486_v24  ;;  %v3273_v41 = vor.u32 %v4239_v29, %v3270_v30  ;;  %v4287_v9 = vld [vmem:[#allocation4 + $0x184] sm:$0xf]  ;;  %v4273_v17 = vld [vmem:[#allocation4 + $0x114] sm:$0xf] }
 0x192   :  { %v907_v4 = vmul.f32 0.5, %v906_v54  ;;  %v881_v12 = vsub.f32 %v873_v61, %v877_v62  ;;  %1444 = vmatpush.bf16.msrb.mxu0 %v3441_v22  ;;  %v3433_v48 = vor.u32 %v4279_v38, %v3430_v40  ;;  %v3422_v54 = vld [vmem:[#allocation4 + $0x138] sm:$0xf0]  ;;  %v3481_v55 = vor.u32 %v4291_v43, %v3478_v44  ;;  %v3398_v29 = vld [vmem:[#allocation4 + $0x108] sm:$0xf0] }
 0x193   :  { %v4929_v14 = vmul.f32 %v831_v63, %v4827_v42  ;;  %v4931_v19 = vpop.eup %4484  ;;  %v863_v21 = vadd.f32 %v862_v5, %v861_v52  ;;  %v3425_v61 = vor.u32 %v4277_v53, %v3422_v54  ;;  %vm900_vm12 = vweird.f32 %v4909_v28 }
 0x194   :  { %v908_v20 = vsub.f32 1.5, %v907_v4  ;;  %v895_v25 = vmul.f32 %v4931_v19, %v4909_v28  ;;  %v885_v26 = vmax.f32 %v881_v12, 0.0  ;;  %1458 = vmatpush.bf16.msrb.mxu1 %v3497_v15  ;;  %vm901_vm11 = vweird.f32 %v4931_v19  ;;  %1423 = vmatpush.bf16.msra.mxu2 %v3273_v41  ;;  %v3462_v12 = vld [vmem:[#allocation4 + $0x188] sm:$0xf0] }
 0x195   :  { %v876_v27 = vmul.f32 %v4929_v14, %v4929_v14  ;;  %v872_v36 = vmul.f32 %v863_v21, %v4827_v42  ;;  %vm902_vm13 = vmor %vm900_vm12, %vm901_vm11  ;;  %v940_v4 = vperm.slane %v4923_v39, 0  ;;  %v954_v16 = vperm.slane %v4947_v37, 0 }
 0x196   :  { %v909_v33 = vmul.f32 %v4911_v32, %v908_v20  ;;  %v896_v45 = vmul.f32 %v4931_v19, %v895_v25  ;;  %v4952_v58 = vadd.f32 1e-05, %v885_v26  ;;  %1445 = vmatpush.bf16.msrb.mxu0 %v3433_v48  ;;  %v3417_v10 = vor.u32 %v4275_v0, %v3414_v2  ;;  %v3406_v20 = vld [vmem:[#allocation4 + $0x118] sm:$0xf0] }
 0x197   :  { %v880_v46 = vsub.f32 %v872_v36, %v876_v27  ;;  %v3465_v23 = vor.u32 %v4287_v9, %v3462_v12  ;;  %v3409_v26 = vor.u32 %v4273_v17, %v3406_v20  ;;  %v943_v41 = vperm.slane %v4923_v39, 3  ;;  %v4307_v9 = vld [vmem:[%s5170_s14 + $0x20] sm:$0xff]  ;;  %v4306_v20 = vld [vmem:[%s5170_s14 + $0x18] sm:$0xff] }
 0x198   :  { %v913_v35 = vsel %vm912_vm10, %v4911_v32, %v909_v33  ;;  %v897_v52 = vmul.f32 0.5, %v896_v45  ;;  %4486 = vrsqrt.f32 %v4952_v58  ;;  %1459 = vmatpush.bf16.msrb.mxu1 %v3489_v51  ;;  %v4289_v32 = vld [vmem:[#allocation4 + $0x194] sm:$0xf]  ;;  %vm930_vm15 = vweird.f32 %v4952_v58 }
 0x199   :  { %v935_v50 = vmul.f32 %v913_v35, %v887_v31  ;;  %v884_v56 = vmax.f32 %v880_v46, 0.0  ;;  %v3473_v5 = vor.u32 %v4289_v32, %v3470_v59  ;;  %v889_v45 = vsub.f32 %v4888_v18, %v4917_v47 }
 0x19a   :  { %v898_v1 = vsub.f32 1.5, %v897_v52  ;;  %1446 = vmatpush.bf16.msrb.mxu0 %v3425_v61  ;;  %v957_v46 = vperm.slane %v4947_v37, 3  ;;  %v942_v18 = vperm.slane %v4923_v39, 2  ;;  %v956_v53 = vperm.slane %v4947_v37, 2  ;;  %v1038_v39 = vld [vmem:[%s5167_s11] sm:$0x3] }
 0x19b   :  { %v949_v57 = vmul.f32 %v941_v13, %v935_v50  ;;  %v4958_v60 = vadd.f32 1e-05, %v884_v56  ;;  %v4271_v13 = vld [vmem:[#allocation4 + $0x104] sm:$0xf]  ;;  %v888_v50 = vsub.f32 %v4901_v49, %v4929_v14  ;;  %v1040_v59 = vperm.slane %v1038_v39, 0 }
 0x19c   :  { %v899_v62 = vmul.f32 %v4931_v19, %v898_v1  ;;  %1460 = vmatpush.bf16.msrb.mxu1 %v3481_v55  ;;  %v3401_v40 = vor.u32 %v4271_v13, %v3398_v29  ;;  %v4305_v13 = vld [vmem:[%s5170_s14 + $0x10] sm:$0xff]  ;;  %vm1731_vm11 = vcmask 1044480   ;;  %vm1727_vm12 = vcmask 39936  }
 0x19d   :  { %v963_v63 = vadd.f32 %v955_v11, %v949_v57  ;;  %4488 = vrsqrt.f32 %v4958_v60  ;;  %vm920_vm3 = vweird.f32 %v4958_v60  ;;  %v4317_v29 = vld [vmem:[%s5170_s14 + $0x70] sm:$0xff] }
 0x19e   :  { %v4487_v6 = vpop.eup %4486  ;;  %v903_v7 = vsel %vm902_vm13, %v4931_v19, %v899_v62  ;;  %1447 = vmatpush.bf16.msrb.mxu0 %v3417_v10 }
 0x19f   :  { %v967_v8 = vmax.f32 %v963_v63, 0.0  ;;  %v934_v28 = vmul.f32 %v903_v7, %v886_v3  ;;  %v925_v15 = vmul.f32 %v4487_v6, %v4952_v58  ;;  %vm931_vm14 = vweird.f32 %v4487_v6  ;;  %v4309_v63 = vld [vmem:[%s5170_s14 + $0x30] sm:$0xff] }
 0x1a0   :  { %1461 = vmatpush.bf16.msrb.mxu1 %v3473_v5  ;;  %vm932_vm1 = vmor %vm930_vm15, %vm931_vm14 }
 0x1a1   :  { %v971_v34 = vpack.c.bf16 %v967_v8, %v967_v8  ;;  %v926_v21 = vmul.f32 %v4487_v6, %v925_v15  ;;  %v948_v22 = vmul.f32 %v940_v4, %v934_v28  ;;  %v4308_v4 = vld [vmem:[%s5170_s14 + $0x28] sm:$0xff] }
 0x1a2   :  { %1448 = vmatpush.bf16.msrb.mxu0 %v3409_v26 }
 0x1a3   :  { %1385 = vmatmul.bf16.vlgmr.msrb.gmra.mxu3 %v971_v34  ;;  %v4489_v24 = vpop.eup %4488  ;;  %v927_v19 = vmul.f32 0.5, %v926_v21  ;;  %v962_v25 = vadd.f32 %v954_v16, %v948_v22  ;;  %v4318_v21 = vld [vmem:[%s5170_s14 + $0x78] sm:$0xff] }
 0x1a4   :  { %v915_v27 = vmul.f32 %v4489_v24, %v4958_v60  ;;  %1462 = vmatpush.bf16.msrb.mxu1 %v3465_v23  ;;  %vm921_vm2 = vweird.f32 %v4489_v24  ;;  %v4310_v60 = vld [vmem:[%s5170_s14 + $0x38] sm:$0xff]  ;;  %1695 = vmatpush.bf16.msrb.mxu3 %v4318_v21  ;;  %v1538_v21 = vld [vmem:[%s5169_s13] sm:$0x3] }
 0x1a5   :  { %v928_v30 = vsub.f32 1.5, %v927_v19  ;;  %v966_v31 = vmax.f32 %v962_v25, 0.0  ;;  %vm922_vm4 = vmor %vm920_vm3, %vm921_vm2 }
 0x1a6   :  { %v916_v33 = vmul.f32 %v4489_v24, %v915_v27  ;;  %1449 = vmatpush.bf16.msrb.mxu0 %v3401_v40 }
 0x1a7   :  { %v929_v36 = vmul.f32 %v4487_v6, %v928_v30  ;;  %v970_v38 = vpack.c.bf16 %v966_v31, %v966_v31 }
 0x1a8   :  { %v917_v51 = vmul.f32 0.5, %v916_v33  ;;  %1696 = vmatpush.bf16.msrb.mxu3 %v4317_v29 }
 0x1a9   :  { %v933_v43 = vsel %vm932_vm1, %v4487_v6, %v929_v36  ;;  %1372 = vmatmul.bf16.vlgmr.msrb.gmra.mxu2 %v970_v38 }
 0x1aa   :  { %v937_v44 = vmul.f32 %v933_v43, %v889_v45  ;;  %v918_v35 = vsub.f32 1.5, %v917_v51  ;;  %1682 = vmatpush.bf16.msrb.mxu2 %v4310_v60  ;;  %v4304_v45 = vld [vmem:[%s5170_s14 + $0x8] sm:$0xff] }
 0x1ab   :  { %v4316_v51 = vld [vmem:[%s5170_s14 + $0x68] sm:$0xff] }
 0x1ac   :  { %v919_v48 = vmul.f32 %v4489_v24, %v918_v35  ;;  %v951_v58 = vmul.f32 %v943_v41, %v937_v44  ;;  %1697 = vmatpush.bf16.msrb.mxu3 %v4316_v51 }
 0x1ae   :  { %v923_v47 = vsel %vm922_vm4, %v4489_v24, %v919_v48  ;;  %v965_v52 = vadd.f32 %v957_v46, %v951_v58  ;;  %1683 = vmatpush.bf16.msrb.mxu2 %v4309_v63  ;;  %v4303_v46 = vld [vmem:[%s5170_s14] sm:$0xff] }
 0x1af   :  { %v936_v11 = vmul.f32 %v923_v47, %v888_v50  ;;  %v4315_v48 = vld [vmem:[%s5170_s14 + $0x60] sm:$0xff] }
 0x1b0   :  { %v969_v54 = vmax.f32 %v965_v52, 0.0  ;;  %1698 = vmatpush.bf16.msrb.mxu3 %v4315_v48 }
 0x1b1   :  { %v950_v56 = vmul.f32 %v942_v18, %v936_v11 }
 0x1b2   :  { %v973_v55 = vpack.c.bf16 %v969_v54, %v969_v54  ;;  %1684 = vmatpush.bf16.msrb.mxu2 %v4308_v4 }
 0x1b3   :  { %1437 = vmatmul.bf16.vlgmr.msra.gmra.mxu3 %v971_v34  ;;  %v964_v1 = vadd.f32 %v956_v53, %v950_v56  ;;  %v1041_v34 = vperm.slane %v1038_v39, 1 }
 0x1b4   :  { %1411 = vmatmul.bf16.vlgmr.msra.gmra.mxu1 %v973_v55 }
 0x1b5   :  { %v968_v57 = vmax.f32 %v964_v1, 0.0  ;;  %v4314_v1 = vld [vmem:[%s5170_s14 + $0x58] sm:$0xff] }
 0x1b6   :  { %1685 = vmatpush.bf16.msrb.mxu2 %v4307_v9  ;;  %1699 = vmatpush.bf16.msrb.mxu3 %v4314_v1 }
 0x1b7   :  { %v972_v32 = vpack.c.bf16 %v968_v57, %v968_v57 }
 0x1b9   :  { %1398 = vmatmul.bf16.vlgmr.msra.gmra.mxu0 %v972_v32  ;;  %1424 = vmatmul.bf16.vlgmr.msra.gmra.mxu2 %v970_v38 }
 0x1ba   :  { %1686 = vmatpush.bf16.msrb.mxu2 %v4306_v20 }
 0x1be   :  { %1687 = vmatpush.bf16.msrb.mxu2 %v4305_v13 }
 0x1c2   :  { %1688 = vmatpush.bf16.msrb.mxu2 %v4304_v45 }
 0x1c4   :  { %1463 = vmatmul.bf16.vlgmr.msrb.gmra.mxu1 %v973_v55 }
 0x1c6   :  { %1689 = vmatpush.bf16.msrb.mxu2 %v4303_v46 }
 0x1c9   :  { %1450 = vmatmul.bf16.vlgmr.msrb.gmra.mxu0 %v972_v32 }
 0x226   :  { %v1386_v49 = vpop.f32.mrf.mxu3 }
 0x22c   :  { %v1373_v14 = vpop.f32.mrf.mxu2 }
 0x22d   :  { %v1374_v61 = vadd.f32 %v1373_v14, %v1040_v59  ;;  %v4313_v14 = vld [vmem:[%s5170_s14 + $0x50] sm:$0xff] }
 0x22e   :  { %v1388_v37 = vpop.f32.mrf.mxu3  ;;  %1700 = vmatpush.bf16.msrb.mxu3 %v4313_v14 }
 0x22f   :  { %v1387_v2 = vadd.f32 %v1386_v49, %v1374_v61 }
 0x231   :  { %v1412_v62 = vpop.f32.mrf.mxu1 }
 0x234   :  { %v1375_v0 = vpop.f32.mrf.mxu2 }
 0x236   :  { %v1438_v3 = vpop.f32.mrf.mxu3  ;;  %v1399_v5 = vpop.f32.mrf.mxu0 }
 0x237   :  { %v1400_v6 = vadd.f32 %v1399_v5, %v1387_v2  ;;  %v4311_v5 = vld [vmem:[%s5170_s14 + $0x40] sm:$0xff] }
 0x239   :  { %v4992_v7 = vadd.f32 %v1412_v62, %v1400_v6  ;;  %v1414_v8 = vpop.f32.mrf.mxu1  ;;  %v4312_v62 = vld [vmem:[%s5170_s14 + $0x48] sm:$0xff] }
 0x23a   :  { %1701 = vmatpush.bf16.msrb.mxu3 %v4312_v62 }
 0x23b   :  { %v1468_v12 = vrot.slane %v4992_v7, 4  ;;  %v1482_v28 = vmul.f32 %v4992_v7, %v4992_v7 }
 0x23c   :  { %v1425_v15 = vpop.f32.mrf.mxu2 }
 0x23d   :  { %v1469_v16 = vadd.f32 %v1468_v12, %v4992_v7  ;;  %v1484_v10 = vrot.slane %v1482_v28, 4  ;;  %v1426_v26 = vadd.f32 %v1425_v15, %v1041_v34  ;;  %v1530_v34 = vld [vmem:[%s5168_s12] sm:$0x3] }
 0x23e   :  { %v1440_v17 = vpop.f32.mrf.mxu3  ;;  %v1401_v22 = vpop.f32.mrf.mxu0  ;;  %1702 = vmatpush.bf16.msrb.mxu3 %v4311_v5  ;;  %v3816_v5 = vld [vmem:[#allocation6 + $0x1c0] sm:$0xf] }
 0x23f   :  { %v1470_v23 = vrot.slane %v1469_v16, 2  ;;  %v1485_v24 = vadd.f32 %v1484_v10, %v1482_v28  ;;  %v1439_v40 = vadd.f32 %v1438_v3, %v1426_v26  ;;  %v1532_v22 = vperm.slane %v1530_v34, 0 }
 0x241   :  { %v1471_v19 = vadd.f32 %v1470_v23, %v1469_v16  ;;  %v1486_v25 = vrot.slane %v1485_v24, 2  ;;  %v1464_v27 = vpop.f32.mrf.mxu1 }
 0x243   :  { %v1472_v30 = vrot.slane %v1471_v19, 1  ;;  %v1487_v31 = vadd.f32 %v1486_v25, %v1485_v24 }
 0x244   :  { %v1427_v33 = vpop.f32.mrf.mxu2 }
 0x245   :  { %v1473_v36 = vadd.f32 %v1472_v30, %v1471_v19  ;;  %v1488_v38 = vrot.slane %v1487_v31, 1  ;;  %v1540_v19 = vperm.slane %v1538_v21, 0 }
 0x246   :  { %v1451_v41 = vpop.f32.mrf.mxu0 }
 0x247   :  { %v1480_v43 = vmul.f32 %v1473_v36, %v4827_v42  ;;  %v1489_v44 = vadd.f32 %v1488_v38, %v1487_v31  ;;  %v1452_v35 = vadd.f32 %v1451_v41, %v1439_v40  ;;  %v1533_v40 = vperm.slane %v1530_v34, 1  ;;  %v3672_v34 = vld [vmem:[#allocation6 + $0xa0] sm:$0xf] }
 0x248   :  { %v1541_v41 = vperm.slane %v1538_v21, 1  ;;  %v3800_v21 = vld [vmem:[#allocation6 + $0x1a0] sm:$0xf] }
 0x249   :  { %v1496_v58 = vmul.f32 %v1489_v44, %v4827_v42  ;;  %v1498_v50 = vmul.f32 %v1480_v43, %v1480_v43  ;;  %v5027_v18 = vadd.f32 %v1464_v27, %v1452_v35  ;;  %v1466_v47 = vpop.f32.mrf.mxu1 }
 0x24a   :  { %v4474_v47 = vld [vmem:[%s5171_s15] ss:$0 sm:$0xff] }
 0x24b   :  { %v1500_v52 = vsub.f32 %v1496_v58, %v1498_v50  ;;  %v1474_v11 = vrot.slane %v5027_v18, 4  ;;  %v1483_v53 = vmul.f32 %v5027_v18, %v5027_v18  ;;  %v1719_v50 = vld [vmem:[%s5172_s16] sm:$0x1f] }
 0x24c   :  { %3586 = vmatpush.msk.msra.mxu0 %vm1731_vm11, %v1719_v50  ;;  %v3642_v50 = vld [vmem:[#allocation6 + $0x70] sm:$0xf0] }
 0x24d   :  { %v1502_v54 = vmax.f32 %v1500_v52, 0.0  ;;  %v1475_v56 = vadd.f32 %v1474_v11, %v5027_v18  ;;  %v1490_v55 = vrot.slane %v1483_v53, 4 }
 0x24e   :  { %v1453_v57 = vpop.f32.mrf.mxu0 }
 0x24f   :  { %v1506_v32 = vadd.f32 1e-05, %v1502_v54  ;;  %v1476_v49 = vrot.slane %v1475_v56, 2  ;;  %v1491_v39 = vadd.f32 %v1490_v55, %v1483_v53 }
 0x251   :  { %4490 = vrsqrt.f32 %v1506_v32  ;;  %v1477_v59 = vadd.f32 %v1476_v49, %v1475_v56  ;;  %v1492_v37 = vrot.slane %v1491_v39, 2  ;;  %vm1514_vm6 = vweird.f32 %v1506_v32  ;;  %v4349_v49 = vld [vmem:[#allocation6 + $0xec] sm:$0xf0] }
 0x253   :  { %v1478_v60 = vrot.slane %v1477_v59, 1  ;;  %v1493_v61 = vadd.f32 %v1492_v37, %v1491_v39  ;;  %v3832_v39 = vld [vmem:[#allocation6 + $0x1e0] sm:$0xf]  ;;  %v4347_v37 = vld [vmem:[#allocation6 + $0xe4] sm:$0xf] }
 0x255   :  { %v1479_v63 = vadd.f32 %v1478_v60, %v1477_v59  ;;  %v1494_v0 = vrot.slane %v1493_v61, 1  ;;  %v4381_v59 = vld [vmem:[#allocation6 + $0x1ec] sm:$0xf0]  ;;  %v3706_v60 = vld [vmem:[#allocation6 + $0xf0] sm:$0xf0] }
 0x256   :  { %v3709_v62 = vor.u32 %v4347_v37, %v3706_v60 }
 0x257   :  { %v4491_v2 = vpop.eup %4490  ;;  %v1481_v3 = vmul.f32 %v1479_v63, %v4827_v42  ;;  %v1495_v4 = vadd.f32 %v1494_v0, %v1493_v61  ;;  %v3833_v61 = vor.u32 %v4381_v59, %v3832_v39  ;;  %v4379_v63 = vld [vmem:[#allocation6 + $0x1e4] sm:$0xf]  ;;  %v3834_v0 = vld [vmem:[#allocation6 + $0x1f0] sm:$0xf0] }
 0x258   :  { %v1509_v6 = vmul.f32 %v4491_v2, %v1506_v32  ;;  %vm1515_vm5 = vweird.f32 %v4491_v2  ;;  %v3704_v32 = vld [vmem:[#allocation6 + $0xe0] sm:$0xf]  ;;  %2202 = vmatpush.bf16.msra.mxu2 %v3709_v62  ;;  %v3626_v39 = vld [vmem:[#allocation6 + $0x50] sm:$0xf0] }
 0x259   :  { %v1497_v8 = vmul.f32 %v1495_v4, %v4827_v42  ;;  %v1499_v9 = vmul.f32 %v1481_v3, %v1481_v3  ;;  %v1504_v42 = vsub.f32 %v4992_v7, %v1480_v43  ;;  %vm1516_vm7 = vmor %vm1514_vm6, %vm1515_vm5  ;;  %v1505_v7 = vsub.f32 %v5027_v18, %v1481_v3  ;;  %v1720_v18 = vld [vmem:[%s5172_s16 + $0x8] sm:$0x1f]  ;;  %s4612_s16 = smov 64   ;;  %v4345_v4 = vld [vmem:[#allocation6 + $0xcc] sm:$0xf0] }
 0x25a   :  { %v1510_v12 = vmul.f32 %v4491_v2, %v1509_v6  ;;  %3588 = vmatpush.msk.msra.mxu1 %vm1731_vm11, %v1720_v18  ;;  %v3705_v14 = vor.u32 %v4349_v49, %v3704_v32  ;;  %v3837_v3 = vor.u32 %v4379_v63, %v3834_v0  ;;  %v4377_v6 = vld [vmem:[#allocation6 + $0x1cc] sm:$0xf0]  ;;  %v4363_v18 = vld [vmem:[#allocation6 + $0x164] sm:$0xf]  ;;  %v3754_v59 = vld [vmem:[#allocation6 + $0x150] sm:$0xf0] }
 0x25b   :  { %v1501_v28 = vsub.f32 %v1497_v8, %v1499_v9  ;;  %v3817_v9 = vor.u32 %v4377_v6, %v3816_v5  ;;  %v4361_v32 = vld [vmem:[#allocation6 + $0x14c] sm:$0xf0]  ;;  %v4327_v49 = vld [vmem:[#allocation6 + $0x44] sm:$0xf]  ;;  %v3608_v62 = vld [vmem:[#allocation6 + $0x20] sm:$0xf] }
 0x25c   :  { %v1511_v15 = vmul.f32 0.5, %v1510_v12  ;;  %2176 = vmatpush.bf16.msrb.mxu0 %v3705_v14  ;;  %2189 = vmatpush.bf16.msrb.mxu1 %v3833_v61  ;;  %v4343_v12 = vld [vmem:[#allocation6 + $0xc4] sm:$0xf]  ;;  %v3629_v61 = vor.u32 %v4327_v49, %v3626_v39  ;;  %v4325_v63 = vld [vmem:[#allocation6 + $0x2c] sm:$0xf0] }
 0x25d   :  { %v1503_v16 = vmax.f32 %v1501_v28, 0.0  ;;  %v3690_v28 = vld [vmem:[#allocation6 + $0xd0] sm:$0xf0]  ;;  %2215 = vmatpush.bf16.msra.mxu3 %v3837_v3  ;;  %v4359_v14 = vld [vmem:[#allocation6 + $0x144] sm:$0xf] }
 0x25e   :  { %v1512_v10 = vsub.f32 1.5, %v1511_v15  ;;  %v4375_v15 = vld [vmem:[#allocation6 + $0x1c4] sm:$0xf]  ;;  %v3736_v0 = vld [vmem:[#allocation6 + $0x120] sm:$0xf] }
 0x25f   :  { %v1507_v17 = vadd.f32 1e-05, %v1503_v16  ;;  %v3693_v16 = vor.u32 %v4343_v12, %v3690_v28  ;;  %v4357_v3 = vld [vmem:[#allocation6 + $0x12c] sm:$0xf0]  ;;  %v3610_v5 = vld [vmem:[#allocation6 + $0x30] sm:$0xf0] }
 0x260   :  { %v1513_v20 = vmul.f32 %v4491_v2, %v1512_v10  ;;  %v3818_v10 = vld [vmem:[#allocation6 + $0x1d0] sm:$0xf0]  ;;  %2190 = vmatpush.bf16.msrb.mxu1 %v3817_v9  ;;  %v1712_v6 = vld [vmem:[%s5200_s0] sm:$0xff]  ;;  %v3609_v9 = vor.u32 %v4325_v63, %v3608_v62  ;;  %v4374_v49 = vld [vmem:[#allocation6 + $0x1b4] sm:$0xf0] }
 0x261   :  { %4492 = vrsqrt.f32 %v1507_v17  ;;  %vm1524_vm9 = vweird.f32 %v1507_v17  ;;  %2203 = vmatpush.bf16.msra.mxu2 %v3693_v16  ;;  %v3738_v12 = vld [vmem:[#allocation6 + $0x130] sm:$0xf0]  ;;  %v3592_v28 = vld [vmem:[#allocation6] sm:$0xf]  ;;  %v4340_v39 = vld [vmem:[#allocation6 + $0xac] sm:$0xf] }
 0x262   :  { %v1517_v23 = vsel %vm1516_vm7, %v4491_v2, %v1513_v20  ;;  %v3688_v2 = vld [vmem:[#allocation6 + $0xc0] sm:$0xf]  ;;  %v3821_v20 = vor.u32 %v4375_v15, %v3818_v10  ;;  %v4321_v15 = vld [vmem:[#allocation6 + $0xc] sm:$0xf0]  ;;  %v3737_v10 = vor.u32 %v4357_v3, %v3736_v0  ;;  %v3664_v63 = vld [vmem:[#allocation6 + $0x88] sm:$0xf] }
 0x263   :  { %v1528_v24 = vmul.f32 %v1517_v23, %v1504_v42  ;;  %v3689_v8 = vor.u32 %v4345_v4, %v3688_v2  ;;  %v4373_v42 = vld [vmem:[#allocation6 + $0x1ac] sm:$0xf0]  ;;  %v3757_v2 = vor.u32 %v4359_v14, %v3754_v59  ;;  %v4323_v4 = vld [vmem:[#allocation6 + $0x24] sm:$0xf]  ;;  %v3682_v14 = vld [vmem:[#allocation6 + $0xb8] sm:$0xf0] }
 0x264   :  { %2216 = vmatpush.bf16.msra.mxu3 %v3821_v20  ;;  %v4353_v20 = vld [vmem:[#allocation6 + $0x10c] sm:$0xf0]  ;;  %v4338_v0 = vld [vmem:[#allocation6 + $0x94] sm:$0xf0] }
 0x265   :  { %v1536_v25 = vmul.f32 %v1532_v22, %v1528_v24  ;;  %v4339_v22 = vld [vmem:[#allocation6 + $0xa4] sm:$0xf]  ;;  %2177 = vmatpush.bf16.msrb.mxu0 %v3689_v8  ;;  %v3674_v24 = vld [vmem:[#allocation6 + $0xb0] sm:$0xf0]  ;;  %v3665_v3 = vor.u32 %v4338_v0, %v3664_v63 }
 0x266   :  { %v4355_v8 = vld [vmem:[#allocation6 + $0x124] sm:$0xf] }
 0x267   :  { %v4493_v26 = vpop.eup %4492  ;;  %v1544_v27 = vadd.f32 %v1540_v19, %v1536_v25  ;;  %v4371_v19 = vld [vmem:[#allocation6 + $0x1a4] sm:$0xf]  ;;  %v3802_v25 = vld [vmem:[#allocation6 + $0x1b0] sm:$0xf0] }
 0x268   :  { %v1519_v13 = vmul.f32 %v4493_v26, %v1507_v17  ;;  %vm1525_vm8 = vweird.f32 %v4493_v26  ;;  %v4341_v17 = vld [vmem:[#allocation6 + $0xac] sm:$0xf0] }
 0x269   :  { %v1546_v29 = vmax.f32 %v1544_v27, 0.0  ;;  %vm1526_vm10 = vmor %vm1524_vm9, %vm1525_vm8  ;;  %v3673_v23 = vor.u32 %v4341_v17, %v3672_v34  ;;  %v3677_v27 = vor.u32 %v4339_v22, %v3674_v24  ;;  %v3613_v34 = vor.u32 %v4323_v4, %v3610_v5  ;;  %v3720_v17 = vld [vmem:[#allocation6 + $0x100] sm:$0xf]  ;;  %v3594_v22 = vld [vmem:[#allocation6 + $0x10] sm:$0xf0] }
 0x26a   :  { %v1520_v30 = vmul.f32 %v4493_v26, %v1519_v13  ;;  %v3656_v13 = vld [vmem:[#allocation6 + $0x80] sm:$0xf]  ;;  %v3712_v24 = vld [vmem:[#allocation6 + $0xe8] sm:$0xf]  ;;  %v4370_v4 = vld [vmem:[#allocation6 + $0x194] sm:$0xf0] }
 0x26b   :  { %v1548_v31 = vpack.c.bf16 %v1546_v29, %v1546_v29  ;;  %v4337_v29 = vld [vmem:[#allocation6 + $0x8c] sm:$0xf0]  ;;  %2178 = vmatpush.bf16.msrb.mxu0 %v3673_v23  ;;  %2204 = vmatpush.bf16.msra.mxu2 %v3677_v27  ;;  %v4351_v23 = vld [vmem:[#allocation6 + $0x104] sm:$0xf]  ;;  %v4382_v27 = vld [vmem:[#allocation6 + $0x1f4] sm:$0xf0] }
 0x26c   :  { %v1521_v33 = vmul.f32 0.5, %v1520_v30  ;;  %v3784_v30 = vld [vmem:[#allocation6 + $0x180] sm:$0xf]  ;;  %v4336_v5 = vld [vmem:[#allocation6 + $0x8c] sm:$0xf] }
 0x26d   :  { %1690 = vmatmul.bf16.vlgmr.msrb.gmra.mxu2 %v1548_v31  ;;  %v3805_v31 = vor.u32 %v4371_v19, %v3802_v25  ;;  %v3741_v19 = vor.u32 %v4355_v8, %v3738_v12  ;;  %v4350_v25 = vld [vmem:[#allocation6 + $0xf4] sm:$0xf0]  ;;  %v4368_v12 = vld [vmem:[#allocation6 + $0x18c] sm:$0xf] }
 0x26e   :  { %v1522_v36 = vsub.f32 1.5, %v1521_v33  ;;  %v4369_v33 = vld [vmem:[#allocation6 + $0x18c] sm:$0xf0] }
 0x26f   :  { %2217 = vmatpush.bf16.msra.mxu3 %v3805_v31  ;;  %v4348_v31 = vld [vmem:[#allocation6 + $0xec] sm:$0xf] }
 0x270   :  { %v1523_v38 = vmul.f32 %v4493_v26, %v1522_v36  ;;  %v4335_v36 = vld [vmem:[#allocation6 + $0x84] sm:$0xf] }
 0x272   :  { %v1527_v45 = vsel %vm1526_vm10, %v4493_v26, %v1523_v38  ;;  %v3801_v26 = vor.u32 %v4373_v42, %v3800_v21  ;;  %v3658_v38 = vld [vmem:[#allocation6 + $0x90] sm:$0xf0]  ;;  %v4319_v21 = vld [vmem:[#allocation6 + $0x4] sm:$0xf] }
 0x273   :  { %v1529_v51 = vmul.f32 %v1527_v45, %v1505_v7  ;;  %v4367_v7 = vld [vmem:[#allocation6 + $0x184] sm:$0xf]  ;;  %v3657_v45 = vor.u32 %v4337_v29, %v3656_v13  ;;  %v3593_v29 = vor.u32 %v4321_v15, %v3592_v28  ;;  %v3794_v28 = vld [vmem:[#allocation6 + $0x198] sm:$0xf0] }
 0x274   :  { %2191 = vmatpush.bf16.msrb.mxu1 %v3801_v26  ;;  %v3840_v26 = vld [vmem:[#allocation6 + $0x1e8] sm:$0xf]  ;;  %v3797_v15 = vor.u32 %v4368_v12, %v3794_v28 }
 0x275   :  { %v1537_v43 = vmul.f32 %v1533_v40, %v1529_v51  ;;  %v3786_v40 = vld [vmem:[#allocation6 + $0x190] sm:$0xf0]  ;;  %v3785_v51 = vor.u32 %v4369_v33, %v3784_v30  ;;  %2179 = vmatpush.bf16.msrb.mxu0 %v3657_v45  ;;  %v3714_v33 = vld [vmem:[#allocation6 + $0xf8] sm:$0xf0]  ;;  %v3713_v45 = vor.u32 %v4350_v25, %v3712_v24  ;;  %v4364_v24 = vld [vmem:[#allocation6 + $0x16c] sm:$0xf] }
 0x276   :  { %v3722_v30 = vld [vmem:[#allocation6 + $0x110] sm:$0xf0]  ;;  %v3632_v25 = vld [vmem:[#allocation6 + $0x48] sm:$0xf] }
 0x277   :  { %v1545_v44 = vadd.f32 %v1541_v41, %v1537_v43  ;;  %v3661_v41 = vor.u32 %v4335_v36, %v3658_v38  ;;  %v3640_v43 = vld [vmem:[#allocation6 + $0x60] sm:$0xf]  ;;  %v3721_v36 = vor.u32 %v4353_v20, %v3720_v17  ;;  %v3597_v38 = vor.u32 %v4319_v21, %v3594_v22  ;;  %v4366_v20 = vld [vmem:[#allocation6 + $0x174] sm:$0xf0]  ;;  %v4332_v21 = vld [vmem:[#allocation6 + $0x6c] sm:$0xf] }
 0x278   :  { %2192 = vmatpush.bf16.msrb.mxu1 %v3785_v51  ;;  %v3841_v51 = vor.u32 %v4382_v27, %v3840_v26  ;;  %v4330_v27 = vld [vmem:[#allocation6 + $0x54] sm:$0xf0] }
 0x279   :  { %v1547_v35 = vmax.f32 %v1545_v44, 0.0  ;;  %v4333_v44 = vld [vmem:[#allocation6 + $0x6c] sm:$0xf0]  ;;  %2205 = vmatpush.bf16.msra.mxu2 %v3661_v41  ;;  %v3696_v41 = vld [vmem:[#allocation6 + $0xc8] sm:$0xf] }
 0x27b   :  { %v1549_v46 = vpack.c.bf16 %v1547_v35, %v1547_v35  ;;  %v3768_v35 = vld [vmem:[#allocation6 + $0x160] sm:$0xf] }
 0x27d   :  { %1703 = vmatmul.bf16.vlgmr.msrb.gmra.mxu3 %v1549_v46  ;;  %v3789_v46 = vor.u32 %v4367_v7, %v3786_v40  ;;  %v4380_v7 = vld [vmem:[#allocation6 + $0x1ec] sm:$0xf]  ;;  %v3842_v40 = vld [vmem:[#allocation6 + $0x1f8] sm:$0xf0] }
 0x27f   :  { %2218 = vmatpush.bf16.msra.mxu3 %v3789_v46  ;;  %v4378_v46 = vld [vmem:[#allocation6 + $0x1d4] sm:$0xf0] }
 0x2f0   :  { %v1691_v48 = vpop.f32.mrf.mxu2 }
 0x2f1   :  { %v1692_v52 = vadd.f32 %v4474_v47, %v1691_v48  ;;  %v4365_v48 = vld [vmem:[#allocation6 + $0x16c] sm:$0xf0]  ;;  %v3770_v47 = vld [vmem:[#allocation6 + $0x170] sm:$0xf0] }
 0x2f8   :  { %v1693_v58 = vpop.f32.mrf.mxu2 }
 0x2f9   :  { %v4331_v58 = vld [vmem:[#allocation6 + $0x64] sm:$0xf] }
 0x300   :  { %v1704_v11 = vpop.f32.mrf.mxu3 }
 0x301   :  { %v5064_v53 = vadd.f32 %v1704_v11, %v1692_v52  ;;  %v3641_v52 = vor.u32 %v4333_v44, %v3640_v43  ;;  %v3769_v11 = vor.u32 %v4365_v48, %v3768_v35  ;;  %v3717_v43 = vor.u32 %v4348_v31, %v3714_v33  ;;  %v4346_v44 = vld [vmem:[#allocation6 + $0xd4] sm:$0xf0]  ;;  %v3824_v35 = vld [vmem:[#allocation6 + $0x1c8] sm:$0xf]  ;;  %v4328_v33 = vld [vmem:[#allocation6 + $0x4c] sm:$0xf] }
 0x302   :  { %v3845_v48 = vor.u32 %v4380_v7, %v3842_v40  ;;  %v3762_v40 = vld [vmem:[#allocation6 + $0x158] sm:$0xf0] }
 0x303   :  { %v1708_v54 = vmul.f32 0.5, %v5064_v53  ;;  %2180 = vmatpush.bf16.msrb.mxu0 %v3641_v52  ;;  %2193 = vmatpush.bf16.msrb.mxu1 %v3769_v11  ;;  %v3697_v52 = vor.u32 %v4346_v44, %v3696_v41  ;;  %v3825_v11 = vor.u32 %v4378_v46, %v3824_v35  ;;  %v4324_v44 = vld [vmem:[#allocation6 + $0x2c] sm:$0xf]  ;;  %v3618_v46 = vld [vmem:[#allocation6 + $0x38] sm:$0xf0] }
 0x305   :  { %v1709_v56 = vmul.f32 1.442695, %v1708_v54  ;;  %v3645_v54 = vor.u32 %v4331_v58, %v3642_v50  ;;  %v4344_v58 = vld [vmem:[#allocation6 + $0xcc] sm:$0xf]  ;;  %v3698_v50 = vld [vmem:[#allocation6 + $0xd8] sm:$0xf0] }
 0x307   :  { %4494 = vpow2.f32 %v1709_v56  ;;  %v3624_v56 = vld [vmem:[#allocation6 + $0x40] sm:$0xf]  ;;  %2206 = vmatpush.bf16.msra.mxu2 %v3645_v54  ;;  %v3701_v54 = vor.u32 %v4344_v58, %v3698_v50  ;;  %v3746_v58 = vld [vmem:[#allocation6 + $0x138] sm:$0xf0] }
 0x308   :  { %v1706_v55 = vpop.f32.mrf.mxu3 }
 0x309   :  { %v4329_v55 = vld [vmem:[#allocation6 + $0x4c] sm:$0xf0] }
 0x30a   :  { %v3625_v37 = vor.u32 %v4329_v55, %v3624_v56  ;;  %v3680_v55 = vld [vmem:[#allocation6 + $0xa8] sm:$0xf] }
 0x30b   :  { %2207 = vmatpush.bf16.msra.mxu2 %v3629_v61  ;;  %v3810_v61 = vld [vmem:[#allocation6 + $0x1b8] sm:$0xf0] }
 0x30c   :  { %2181 = vmatpush.bf16.msrb.mxu0 %v3625_v37  ;;  %v3685_v37 = vor.u32 %v4340_v39, %v3682_v14 }
 0x30d   :  { %v4495_v1 = vpop.eup %4494 }
 0x30e   :  { %v1711_v57 = vmin.f32 %v4495_v1, 1.0  ;;  %v3752_v1 = vld [vmem:[#allocation6 + $0x140] sm:$0xf] }
 0x30f   :  { %v3753_v60 = vor.u32 %v4361_v32, %v3752_v1  ;;  %2208 = vmatpush.bf16.msra.mxu2 %v3613_v34  ;;  %v4342_v1 = vld [vmem:[#allocation6 + $0xb4] sm:$0xf0]  ;;  %v3776_v34 = vld [vmem:[#allocation6 + $0x168] sm:$0xf] }
 0x310   :  { %1714 = vrot.lane.b32.xlu0 %v1711_v57, %s4611_s29  ;;  %v3773_v57 = vor.u32 %v4363_v18, %v3770_v47  ;;  %2182 = vmatpush.bf16.msrb.mxu0 %v3609_v9  ;;  %v4376_v18 = vld [vmem:[#allocation6 + $0x1cc] sm:$0xf]  ;;  %v3826_v47 = vld [vmem:[#allocation6 + $0x1d8] sm:$0xf0]  ;;  %v3681_v32 = vor.u32 %v4342_v1, %v3680_v55  ;;  %v3777_v22 = vor.u32 %v4366_v20, %v3776_v34  ;;  %v3896_v20 = vld [vmem:[#allocation7 + $0x60] sm:$0xf] }
 0x311   :  { %2194 = vmatpush.bf16.msrb.mxu1 %v3753_v60  ;;  %v3829_v56 = vor.u32 %v4376_v18, %v3826_v47  ;;  %v4372_v60 = vld [vmem:[#allocation6 + $0x1ac] sm:$0xf]  ;;  %v3621_v18 = vor.u32 %v4324_v44, %v3618_v46  ;;  %v3600_v47 = vld [vmem:[#allocation6 + $0x8] sm:$0xf]  ;;  %v3602_v1 = vld [vmem:[#allocation6 + $0x18] sm:$0xf0] }
 0x312   :  { %2219 = vmatpush.bf16.msra.mxu3 %v3773_v57  ;;  %v3808_v57 = vld [vmem:[#allocation6 + $0x1a8] sm:$0xf]  ;;  %v3813_v62 = vor.u32 %v4372_v60, %v3810_v61  ;;  %v4320_v55 = vld [vmem:[#allocation6 + $0xc] sm:$0xf]  ;;  %v3880_v44 = vld [vmem:[#allocation7 + $0x40] sm:$0xf] }
 0x313   :  { %2209 = vmatpush.bf16.msra.mxu2 %v3597_v38  ;;  %v3809_v59 = vor.u32 %v4374_v49, %v3808_v57  ;;  %v4360_v38 = vld [vmem:[#allocation6 + $0x14c] sm:$0xf]  ;;  %v3605_v14 = vor.u32 %v4320_v55, %v3602_v1  ;;  %v3872_v55 = vld [vmem:[#allocation7 + $0x30] sm:$0xf] }
 0x314   :  { %2183 = vmatpush.bf16.msrb.mxu0 %v3593_v29  ;;  %v4362_v29 = vld [vmem:[#allocation6 + $0x154] sm:$0xf0]  ;;  %v3765_v41 = vor.u32 %v4360_v38, %v3762_v40  ;;  %v4352_v57 = vld [vmem:[#allocation6 + $0x10c] sm:$0xf]  ;;  %v4016_v40 = vld [vmem:[#allocation7 + $0x150] sm:$0xf] }
 0x315   :  { %2195 = vmatpush.bf16.msrb.mxu1 %v3737_v10  ;;  %v4334_v10 = vld [vmem:[#allocation6 + $0x74] sm:$0xf0] }
 0x316   :  { %2220 = vmatpush.bf16.msra.mxu3 %v3757_v2  ;;  %v3792_v2 = vld [vmem:[#allocation6 + $0x188] sm:$0xf]  ;;  %v4410_v38 = vld [vmem:[#allocation7 + $0xd4] sm:$0xf0] }
 0x317   :  { %2254 = vmatpush.bf16.msrb.mxu2 %v3717_v43  ;;  %v3793_v8 = vor.u32 %v4370_v4, %v3792_v2  ;;  %v4358_v43 = vld [vmem:[#allocation6 + $0x134] sm:$0xf0] }
 0x318   :  { %2964 = vrot.lane.b32.xlu0 %v5064_v53, %s4612_s16  ;;  %v4398_v4 = vld [vmem:[#allocation7 + $0x74] sm:$0xf0] }
 0x319   :  { %2196 = vmatpush.bf16.msrb.mxu1 %v3721_v36  ;;  %v3634_v36 = vld [vmem:[#allocation6 + $0x58] sm:$0xf0] }
 0x31a   :  { %2221 = vmatpush.bf16.msra.mxu3 %v3741_v19  ;;  %v3778_v19 = vld [vmem:[#allocation6 + $0x178] sm:$0xf0]  ;;  %v3637_v7 = vor.u32 %v4328_v33, %v3634_v36  ;;  %v3952_v36 = vld [vmem:[#allocation7 + $0xd0] sm:$0xf] }
 0x31b   :  { %2255 = vmatpush.bf16.msrb.mxu2 %v3701_v54  ;;  %v3781_v26 = vor.u32 %v4364_v24, %v3778_v19  ;;  %v4024_v19 = vld [vmem:[#allocation7 + $0x160] sm:$0xf]  ;;  %v3953_v46 = vor.u32 %v4410_v38, %v3952_v36  ;;  %v3890_v36 = vld [vmem:[#allocation7 + $0x58] sm:$0xf0] }
 0x31f   :  { %2256 = vmatpush.bf16.msrb.mxu2 %v3685_v37  ;;  %v1721_v37 = vld [vmem:[%s5173_s17] sm:$0x3] }
 0x320   :  { %v1723_v60 = vperm.slane %v1721_v37, 0  ;;  %v1724_v61 = vperm.slane %v1721_v37, 1  ;;  %v4422_v37 = vld [vmem:[#allocation7 + $0x134] sm:$0xf0] }
 0x382   :  { %v1715_v16 = vpop.permute.xlu0 %1714 }
 0x383   :  { %v1717_v42 = vmul.f32 %v1715_v16, %v1712_v6  ;;  %v3666_v6 = vld [vmem:[#allocation6 + $0x98] sm:$0xf0]  ;;  %v3648_v16 = vld [vmem:[#allocation6 + $0x68] sm:$0xf] }
 0x384   :  { %v3669_v9 = vor.u32 %v4336_v5, %v3666_v6  ;;  %v3649_v17 = vor.u32 %v4334_v10, %v3648_v16  ;;  %v3968_v5 = vld [vmem:[#allocation7 + $0xf0] sm:$0xf]  ;;  %v4414_v6 = vld [vmem:[#allocation7 + $0xf4] sm:$0xf0] }
 0x385   :  { %v1718_v13 = vadd.f32 %v1717_v42, %v5064_v53  ;;  %v3725_v53 = vor.u32 %v4351_v23, %v3722_v30  ;;  %v3650_v42 = vld [vmem:[#allocation6 + $0x78] sm:$0xf0]  ;;  %v3633_v30 = vor.u32 %v4330_v27, %v3632_v25  ;;  %v4446_v16 = vld [vmem:[#allocation7 + $0x1f4] sm:$0xf0]  ;;  %v4088_v27 = vld [vmem:[#allocation7 + $0x1e0] sm:$0xf] }
 0x386   :  { %2257 = vmatpush.bf16.msrb.mxu2 %v3669_v9  ;;  %v3653_v23 = vor.u32 %v4332_v21, %v3650_v42  ;;  %v4430_v9 = vld [vmem:[#allocation7 + $0x174] sm:$0xf0]  ;;  %v4396_v21 = vld [vmem:[#allocation7 + $0x64] sm:$0xf0]  ;;  %v3969_v42 = vor.u32 %v4414_v6, %v3968_v5  ;;  %v3856_v5 = vld [vmem:[#allocation7 + $0x10] sm:$0xf] }
 0x387   :  { %3587 = vmatmul.msk.f32.vlgmr.msra.gmra.mxu0 %vm1727_vm12, %v1718_v13  ;;  %3589 = vmatmul.msk.f32.vlgmr.msra.gmra.mxu1 %vm1727_vm12, %v1718_v13  ;;  %v3760_v13 = vld [vmem:[#allocation6 + $0x148] sm:$0xf] }
 0x388   :  { %2228 = vmatpush.bf16.msra.mxu0 %v3713_v45  ;;  %2241 = vmatpush.bf16.msra.mxu1 %v3841_v51  ;;  %v3761_v31 = vor.u32 %v4362_v29, %v3760_v13  ;;  %v3616_v45 = vld [vmem:[#allocation6 + $0x28] sm:$0xf]  ;;  %v4326_v51 = vld [vmem:[#allocation6 + $0x34] sm:$0xf0]  ;;  %v3897_v29 = vor.u32 %v4396_v21, %v3896_v20  ;;  %v3912_v20 = vld [vmem:[#allocation7 + $0x80] sm:$0xf] }
 0x389   :  { %2222 = vmatpush.bf16.msra.mxu3 %v3725_v53  ;;  %v3744_v53 = vld [vmem:[#allocation6 + $0x128] sm:$0xf]  ;;  %v3617_v35 = vor.u32 %v4326_v51, %v3616_v45  ;;  %v4426_v51 = vld [vmem:[#allocation7 + $0x154] sm:$0xf0] }
 0x38a   :  { %2258 = vmatpush.bf16.msrb.mxu2 %v3653_v23  ;;  %v3745_v50 = vor.u32 %v4358_v43, %v3744_v53  ;;  %v4412_v23 = vld [vmem:[#allocation7 + $0xe4] sm:$0xf0]  ;;  %v4442_v53 = vld [vmem:[#allocation7 + $0x1d4] sm:$0xf0] }
 0x38b   :  { %v4444_v13 = vld [vmem:[#allocation7 + $0x1e4] sm:$0xf0] }
 0x38c   :  { %2229 = vmatpush.bf16.msra.mxu0 %v3697_v52  ;;  %2242 = vmatpush.bf16.msra.mxu1 %v3825_v11  ;;  %v4322_v52 = vld [vmem:[#allocation6 + $0x14] sm:$0xf0]  ;;  %v3728_v11 = vld [vmem:[#allocation6 + $0x108] sm:$0xf]  ;;  %v4089_v45 = vor.u32 %v4444_v13, %v4088_v27  ;;  %v3970_v27 = vld [vmem:[#allocation7 + $0xf8] sm:$0xf0] }
 0x38d   :  { %2267 = vmatpush.bf16.msrb.mxu3 %v3845_v48  ;;  %v4356_v48 = vld [vmem:[#allocation6 + $0x12c] sm:$0xf]  ;;  %v3601_v49 = vor.u32 %v4322_v52, %v3600_v47  ;;  %v4424_v52 = vld [vmem:[#allocation7 + $0x144] sm:$0xf0] }
 0x38e   :  { %2259 = vmatpush.bf16.msrb.mxu2 %v3637_v7  ;;  %v3749_v54 = vor.u32 %v4356_v48, %v3746_v58  ;;  %v3944_v48 = vld [vmem:[#allocation7 + $0xc0] sm:$0xf]  ;;  %v4408_v58 = vld [vmem:[#allocation7 + $0xc4] sm:$0xf0] }
 0x38f   :  { %v3945_v1 = vor.u32 %v4408_v58, %v3944_v48  ;;  %v4400_v21 = vld [vmem:[#allocation7 + $0x84] sm:$0xf0]  ;;  %v3882_v48 = vld [vmem:[#allocation7 + $0x48] sm:$0xf0] }
 0x390   :  { %2230 = vmatpush.bf16.msra.mxu0 %v3681_v32  ;;  %2243 = vmatpush.bf16.msra.mxu1 %v3809_v59  ;;  %v3730_v32 = vld [vmem:[#allocation6 + $0x118] sm:$0xf0] }
 0x391   :  { %2268 = vmatpush.bf16.msrb.mxu3 %v3829_v56  ;;  %v4354_v56 = vld [vmem:[#allocation6 + $0x114] sm:$0xf0]  ;;  %v3733_v59 = vor.u32 %v4352_v57, %v3730_v32  ;;  %v3936_v32 = vld [vmem:[#allocation7 + $0xb0] sm:$0xf] }
 0x392   :  { %2260 = vmatpush.bf16.msrb.mxu2 %v3621_v18  ;;  %v3729_v39 = vor.u32 %v4354_v56, %v3728_v11  ;;  %v4008_v18 = vld [vmem:[#allocation7 + $0x140] sm:$0xf]  ;;  %v4390_v57 = vld [vmem:[#allocation7 + $0x34] sm:$0xf0] }
 0x393   :  { %v4072_v11 = vld [vmem:[#allocation7 + $0x1c0] sm:$0xf] }
 0x394   :  { %2231 = vmatpush.bf16.msra.mxu0 %v3665_v3  ;;  %2244 = vmatpush.bf16.msra.mxu1 %v3793_v8  ;;  %v3904_v3 = vld [vmem:[#allocation7 + $0x70] sm:$0xf] }
 0x395   :  { %2269 = vmatpush.bf16.msrb.mxu3 %v3813_v62  ;;  %v4032_v8 = vld [vmem:[#allocation7 + $0x170] sm:$0xf] }
 0x396   :  { %2261 = vmatpush.bf16.msrb.mxu2 %v3605_v14  ;;  %v4033_v24 = vor.u32 %v4430_v9, %v4032_v8  ;;  %v4386_v8 = vld [vmem:[#allocation7 + $0x14] sm:$0xf0]  ;;  %v3920_v9 = vld [vmem:[#allocation7 + $0x90] sm:$0xf] }
 0x398   :  { %2232 = vmatpush.bf16.msra.mxu0 %v3649_v17  ;;  %2245 = vmatpush.bf16.msra.mxu1 %v3777_v22  ;;  %v3905_v17 = vor.u32 %v4398_v4, %v3904_v3  ;;  %v3960_v22 = vld [vmem:[#allocation7 + $0xe0] sm:$0xf] }
 0x399   :  { %2270 = vmatpush.bf16.msrb.mxu3 %v3797_v15  ;;  %v4096_v15 = vld [vmem:[#allocation7 + $0x1f0] sm:$0xf]  ;;  %v3961_v33 = vor.u32 %v4412_v23, %v3960_v22  ;;  %v3913_v22 = vor.u32 %v4400_v21, %v3912_v20  ;;  %v4098_v21 = vld [vmem:[#allocation7 + $0x1f8] sm:$0xf0] }
 0x39a   :  { %v4097_v25 = vor.u32 %v4446_v16, %v4096_v15  ;;  %v3848_v15 = vld [vmem:[#allocation7] sm:$0xf] }
 0x39c   :  { %2233 = vmatpush.bf16.msra.mxu0 %v3633_v30  ;;  %2246 = vmatpush.bf16.msra.mxu1 %v3761_v31  ;;  %v3888_v30 = vld [vmem:[#allocation7 + $0x50] sm:$0xf]  ;;  %v4394_v31 = vld [vmem:[#allocation7 + $0x54] sm:$0xf0] }
 0x39d   :  { %2271 = vmatpush.bf16.msrb.mxu3 %v3781_v26  ;;  %v4428_v26 = vld [vmem:[#allocation7 + $0x164] sm:$0xf0]  ;;  %v3889_v43 = vor.u32 %v4394_v31, %v3888_v30 }
 0x39e   :  { %v4025_v7 = vor.u32 %v4428_v26, %v4024_v19  ;;  %v3898_v19 = vld [vmem:[#allocation7 + $0x68] sm:$0xf0]  ;;  %v4413_v26 = vld [vmem:[#allocation7 + $0xf4] sm:$0xf]  ;;  %v4420_v30 = vld [vmem:[#allocation7 + $0x124] sm:$0xf0] }
 0x39f   :  { %v3973_v13 = vor.u32 %v4413_v26, %v3970_v27  ;;  %v3930_v26 = vld [vmem:[#allocation7 + $0xa8] sm:$0xf0]  ;;  %v4443_v27 = vld [vmem:[#allocation7 + $0x1e4] sm:$0xf] }
 0x3a0   :  { %2234 = vmatpush.bf16.msra.mxu0 %v3617_v35  ;;  %2247 = vmatpush.bf16.msra.mxu1 %v3745_v50  ;;  %v4392_v35 = vld [vmem:[#allocation7 + $0x44] sm:$0xf0]  ;;  %v4017_v50 = vor.u32 %v4426_v51, %v4016_v40  ;;  %v4438_v40 = vld [vmem:[#allocation7 + $0x1b4] sm:$0xf0]  ;;  %v4411_v51 = vld [vmem:[#allocation7 + $0xe4] sm:$0xf] }
 0x3a1   :  { %2272 = vmatpush.bf16.msrb.mxu3 %v3765_v41  ;;  %v4080_v41 = vld [vmem:[#allocation7 + $0x1d0] sm:$0xf]  ;;  %v3881_v56 = vor.u32 %v4392_v35, %v3880_v44  ;;  %v4418_v44 = vld [vmem:[#allocation7 + $0x114] sm:$0xf0] }
 0x3a2   :  { %v4081_v47 = vor.u32 %v4442_v53, %v4080_v41  ;;  %v3962_v41 = vld [vmem:[#allocation7 + $0xe8] sm:$0xf0] }
 0x3a3   :  { %v3965_v53 = vor.u32 %v4411_v51, %v3962_v41  ;;  %v3922_v51 = vld [vmem:[#allocation7 + $0x98] sm:$0xf0] }
 0x3a4   :  { %2235 = vmatpush.bf16.msra.mxu0 %v3601_v49  ;;  %2248 = vmatpush.bf16.msra.mxu1 %v3729_v39  ;;  %v4406_v49 = vld [vmem:[#allocation7 + $0xb4] sm:$0xf0]  ;;  %v4009_v39 = vor.u32 %v4424_v52, %v4008_v18  ;;  %v4436_v18 = vld [vmem:[#allocation7 + $0x1a4] sm:$0xf0]  ;;  %v4409_v52 = vld [vmem:[#allocation7 + $0xd4] sm:$0xf] }
 0x3a5   :  { %2273 = vmatpush.bf16.msrb.mxu3 %v3749_v54  ;;  %v4440_v54 = vld [vmem:[#allocation7 + $0x1c4] sm:$0xf0] }
 0x3a6   :  { %v4073_v14 = vor.u32 %v4440_v54, %v4072_v11  ;;  %v3954_v11 = vld [vmem:[#allocation7 + $0xd8] sm:$0xf0] }
 0x3a7   :  { %v3957_v54 = vor.u32 %v4409_v52, %v3954_v11  ;;  %v4074_v11 = vld [vmem:[#allocation7 + $0x1c8] sm:$0xf0] }
 0x3a9   :  { %2274 = vmatpush.bf16.msrb.mxu3 %v3733_v59  ;;  %v4000_v59 = vld [vmem:[#allocation7 + $0x130] sm:$0xf] }
 0x3aa   :  { %v4001_v3 = vor.u32 %v4422_v37, %v4000_v59  ;;  %v4048_v59 = vld [vmem:[#allocation7 + $0x190] sm:$0xf]  ;;  %v4434_v37 = vld [vmem:[#allocation7 + $0x194] sm:$0xf0] }
 0x404   :  { %v1755_v62 = vpop.f32.mrf.mxu0  ;;  %v1775_v63 = vpop.f32.mrf.mxu1 }
 0x405   :  { %v1756_v0 = vadd.f32 %v1755_v62, %v1723_v60  ;;  %v1776_v2 = vadd.f32 %v1775_v63, %v1724_v61  ;;  %v3873_v60 = vor.u32 %v4390_v57, %v3872_v55  ;;  %v3864_v61 = vld [vmem:[#allocation7 + $0x20] sm:$0xf]  ;;  %v3937_v62 = vor.u32 %v4406_v49, %v3936_v32  ;;  %v4388_v63 = vld [vmem:[#allocation7 + $0x24] sm:$0xf0]  ;;  %v4389_v57 = vld [vmem:[#allocation7 + $0x34] sm:$0xf] }
 0x406   :  { %v3865_v4 = vor.u32 %v4388_v63, %v3864_v61  ;;  %v4416_v55 = vld [vmem:[#allocation7 + $0x104] sm:$0xf0]  ;;  %v3874_v32 = vld [vmem:[#allocation7 + $0x38] sm:$0xf0]  ;;  %v4429_v49 = vld [vmem:[#allocation7 + $0x174] sm:$0xf]  ;;  %v4049_v61 = vor.u32 %v4434_v37, %v4048_v59 }
 0x407   :  { %v1778_v12 = vmax.f32 %v1756_v0, 0.0  ;;  %v1779_v28 = vmax.f32 %v1776_v2, 0.0  ;;  %v3928_v0 = vld [vmem:[#allocation7 + $0xa0] sm:$0xf]  ;;  %v4404_v2 = vld [vmem:[#allocation7 + $0xa4] sm:$0xf0] }
 0x408   :  { %v3929_v6 = vor.u32 %v4404_v2, %v3928_v0  ;;  %v3946_v63 = vld [vmem:[#allocation7 + $0xc8] sm:$0xf0]  ;;  %v4387_v2 = vld [vmem:[#allocation7 + $0x24] sm:$0xf]  ;;  %v4417_v37 = vld [vmem:[#allocation7 + $0x114] sm:$0xf] }
 0x409   :  { %v5077_v10 = vpack.c.bf16 %v1778_v12, %v1778_v12  ;;  %v5079_v34 = vpack.c.bf16 %v1779_v28, %v1779_v28  ;;  %v4402_v12 = vld [vmem:[#allocation7 + $0x94] sm:$0xf0]  ;;  %v3857_v28 = vor.u32 %v4386_v8, %v3856_v5  ;;  %v4040_v8 = vld [vmem:[#allocation7 + $0x180] sm:$0xf] }
 0x40a   :  { %v3921_v16 = vor.u32 %v4402_v12, %v3920_v9  ;;  %v4432_v9 = vld [vmem:[#allocation7 + $0x184] sm:$0xf0] }
 0x40b   :  { %2184 = vmatmul.bf16.vlgmr.msrb.gmra.mxu0 %v5077_v10  ;;  %2197 = vmatmul.bf16.vlgmr.msrb.gmra.mxu1 %v5079_v34 }
 0x40c   :  { %2210 = vmatmul.bf16.vlgmr.msra.gmra.mxu2 %v5077_v10  ;;  %2223 = vmatmul.bf16.vlgmr.msra.gmra.mxu3 %v5079_v34 }
 0x40d   :  { %2678 = vmatpush.bf16.msrb.mxu0 %v3905_v17  ;;  %2691 = vmatpush.bf16.msrb.mxu1 %v3969_v42  ;;  %v4384_v17 = vld [vmem:[#allocation7 + $0x4] sm:$0xf0]  ;;  %v3906_v42 = vld [vmem:[#allocation7 + $0x78] sm:$0xf0] }
 0x40e   :  { %2704 = vmatpush.bf16.msra.mxu2 %v4033_v24  ;;  %2717 = vmatpush.bf16.msra.mxu3 %v4097_v25  ;;  %v4395_v24 = vld [vmem:[#allocation7 + $0x64] sm:$0xf] }
 0x40f   :  { %v3901_v25 = vor.u32 %v4395_v24, %v3898_v19  ;;  %v4018_v24 = vld [vmem:[#allocation7 + $0x158] sm:$0xf0] }
 0x411   :  { %2679 = vmatpush.bf16.msrb.mxu0 %v3897_v29  ;;  %2692 = vmatpush.bf16.msrb.mxu1 %v3961_v33  ;;  %v3992_v29 = vld [vmem:[#allocation7 + $0x120] sm:$0xf]  ;;  %v4393_v33 = vld [vmem:[#allocation7 + $0x54] sm:$0xf] }
 0x412   :  { %2705 = vmatpush.bf16.msra.mxu2 %v4025_v7  ;;  %2718 = vmatpush.bf16.msra.mxu3 %v4089_v45  ;;  %v3993_v31 = vor.u32 %v4420_v30, %v3992_v29  ;;  %v3893_v38 = vor.u32 %v4393_v33, %v3890_v36  ;;  %v4064_v7 = vld [vmem:[#allocation7 + $0x1b0] sm:$0xf]  ;;  %v4090_v29 = vld [vmem:[#allocation7 + $0x1e8] sm:$0xf0]  ;;  %v4423_v36 = vld [vmem:[#allocation7 + $0x144] sm:$0xf] }
 0x413   :  { %v4065_v45 = vor.u32 %v4438_v40, %v4064_v7  ;;  %v4093_v30 = vor.u32 %v4443_v27, %v4090_v29  ;;  %v3850_v33 = vld [vmem:[#allocation7 + $0x8] sm:$0xf0] }
 0x414   :  { %v4010_v7 = vld [vmem:[#allocation7 + $0x148] sm:$0xf0] }
 0x415   :  { %2680 = vmatpush.bf16.msrb.mxu0 %v3889_v43  ;;  %2693 = vmatpush.bf16.msrb.mxu1 %v3953_v46  ;;  %v3984_v43 = vld [vmem:[#allocation7 + $0x110] sm:$0xf]  ;;  %v4391_v46 = vld [vmem:[#allocation7 + $0x44] sm:$0xf]  ;;  %v4013_v40 = vor.u32 %v4423_v36, %v4010_v7 }
 0x416   :  { %2706 = vmatpush.bf16.msra.mxu2 %v4017_v50  ;;  %2719 = vmatpush.bf16.msra.mxu3 %v4081_v47  ;;  %v3985_v35 = vor.u32 %v4418_v44, %v3984_v43  ;;  %v3885_v58 = vor.u32 %v4391_v46, %v3882_v48  ;;  %v4056_v50 = vld [vmem:[#allocation7 + $0x1a0] sm:$0xf]  ;;  %v4082_v43 = vld [vmem:[#allocation7 + $0x1d8] sm:$0xf0] }
 0x417   :  { %v4057_v47 = vor.u32 %v4436_v18, %v4056_v50  ;;  %v4002_v46 = vld [vmem:[#allocation7 + $0x138] sm:$0xf0]  ;;  %v5092_v48 = vld [vmem:[%s5175_s19] sm:$0xf]  ;;  %v4399_v50 = vld [vmem:[#allocation7 + $0x84] sm:$0xf] }
 0x418   :  { %v3914_v18 = vld [vmem:[#allocation7 + $0x88] sm:$0xf0]  ;;  %v1851_v36 = vperm.slane %v5092_v48, 3 }
 0x419   :  { %2681 = vmatpush.bf16.msrb.mxu0 %v3881_v56  ;;  %2694 = vmatpush.bf16.msrb.mxu1 %v3945_v1  ;;  %v3976_v56 = vld [vmem:[#allocation7 + $0x100] sm:$0xf]  ;;  %v3917_v52 = vor.u32 %v4399_v50, %v3914_v18  ;;  %v4453_v50 = vld [vmem:[%s5178_s22 + $0x30] sm:$0xff]  ;;  %v4452_v18 = vld [vmem:[%s5178_s22 + $0x28] sm:$0xff] }
 0x41a   :  { %2707 = vmatpush.bf16.msra.mxu2 %v4009_v39  ;;  %2720 = vmatpush.bf16.msra.mxu3 %v4073_v14  ;;  %v3977_v1 = vor.u32 %v4416_v55, %v3976_v56  ;;  %v3877_v39 = vor.u32 %v4389_v57, %v3874_v32  ;;  %v4034_v14 = vld [vmem:[#allocation7 + $0x178] sm:$0xf0]  ;;  %v4419_v56 = vld [vmem:[#allocation7 + $0x124] sm:$0xf]  ;;  %v3994_v55 = vld [vmem:[#allocation7 + $0x128] sm:$0xf0] }
 0x41b   :  { %2236 = vmatmul.bf16.vlgmr.msra.gmra.mxu0 %v5077_v10  ;;  %2249 = vmatmul.bf16.vlgmr.msra.gmra.mxu1 %v5079_v34  ;;  %v3997_v57 = vor.u32 %v4419_v56, %v3994_v55  ;;  %v4437_v32 = vld [vmem:[#allocation7 + $0x1b4] sm:$0xf]  ;;  %v4448_v55 = vld [vmem:[%s5178_s22 + $0x8] sm:$0xff] }
 0x41c   :  { %2262 = vmatmul.bf16.vlgmr.msrb.gmra.mxu2 %v5077_v10  ;;  %2275 = vmatmul.bf16.vlgmr.msrb.gmra.mxu3 %v5079_v34  ;;  %v4397_v10 = vld [vmem:[#allocation7 + $0x74] sm:$0xf]  ;;  %v3849_v34 = vor.u32 %v4384_v17, %v3848_v15 }
 0x41d   :  { %2682 = vmatpush.bf16.msrb.mxu0 %v3873_v60  ;;  %2695 = vmatpush.bf16.msrb.mxu1 %v3937_v62  ;;  %v3909_v23 = vor.u32 %v4397_v10, %v3906_v42  ;;  %v4037_v60 = vor.u32 %v4429_v49, %v4034_v14  ;;  %v4407_v62 = vld [vmem:[#allocation7 + $0xc4] sm:$0xf]  ;;  %v4405_v15 = vld [vmem:[#allocation7 + $0xb4] sm:$0xf]  ;;  %v4066_v49 = vld [vmem:[#allocation7 + $0x1b8] sm:$0xf0] }
 0x41e   :  { %2708 = vmatpush.bf16.msra.mxu2 %v4001_v3  ;;  %2721 = vmatpush.bf16.msra.mxu3 %v4065_v45  ;;  %v3949_v0 = vor.u32 %v4407_v62, %v3946_v63  ;;  %v3866_v3 = vld [vmem:[#allocation7 + $0x28] sm:$0xf0]  ;;  %v4445_v17 = vld [vmem:[#allocation7 + $0x1f4] sm:$0xf] }
 0x41f   :  { %v3869_v5 = vor.u32 %v4387_v2, %v3866_v3  ;;  %v4101_v10 = vor.u32 %v4445_v17, %v4098_v21  ;;  %v4385_v42 = vld [vmem:[#allocation7 + $0x14] sm:$0xf]  ;;  %v4415_v2 = vld [vmem:[#allocation7 + $0x104] sm:$0xf]  ;;  %v3978_v3 = vld [vmem:[#allocation7 + $0x108] sm:$0xf0] }
 0x420   :  { %v4401_v45 = vld [vmem:[#allocation7 + $0x94] sm:$0xf] }
 0x421   :  { %2683 = vmatpush.bf16.msrb.mxu0 %v3865_v4  ;;  %2696 = vmatpush.bf16.msrb.mxu1 %v3929_v6  ;;  %v4427_v4 = vld [vmem:[#allocation7 + $0x164] sm:$0xf]  ;;  %v4026_v6 = vld [vmem:[#allocation7 + $0x168] sm:$0xf0]  ;;  %v3925_v41 = vor.u32 %v4401_v45, %v3922_v51  ;;  %v4461_v56 = vld [vmem:[%s5178_s22 + $0x70] sm:$0xff] }
 0x422   :  { %2709 = vmatpush.bf16.msra.mxu2 %v3993_v31  ;;  %2722 = vmatpush.bf16.msra.mxu3 %v4057_v47  ;;  %v4029_v12 = vor.u32 %v4427_v4, %v4026_v6  ;;  %v4383_v31 = vld [vmem:[#allocation7 + $0x4] sm:$0xf]  ;;  %v4433_v6 = vld [vmem:[#allocation7 + $0x194] sm:$0xf] }
 0x423   :  { %v4439_v47 = vld [vmem:[#allocation7 + $0x1c4] sm:$0xf] }
 0x425   :  { %2684 = vmatpush.bf16.msrb.mxu0 %v3857_v28  ;;  %2697 = vmatpush.bf16.msrb.mxu1 %v3921_v16  ;;  %v4041_v28 = vor.u32 %v4432_v9, %v4040_v8  ;;  %v3938_v16 = vld [vmem:[#allocation7 + $0xb8] sm:$0xf0]  ;;  %v1849_v9 = vperm.slane %v5092_v48, 1 }
 0x426   :  { %2710 = vmatpush.bf16.msra.mxu2 %v3985_v35  ;;  %2723 = vmatpush.bf16.msra.mxu3 %v4049_v61  ;;  %v3941_v20 = vor.u32 %v4405_v15, %v3938_v16  ;;  %v4421_v35 = vld [vmem:[#allocation7 + $0x134] sm:$0xf]  ;;  %v4435_v61 = vld [vmem:[#allocation7 + $0x1a4] sm:$0xf]  ;;  %v4050_v8 = vld [vmem:[#allocation7 + $0x198] sm:$0xf0] }
 0x427   :  { %v4053_v15 = vor.u32 %v4433_v6, %v4050_v8 }
 0x429   :  { %2685 = vmatpush.bf16.msrb.mxu0 %v3849_v34  ;;  %2698 = vmatpush.bf16.msrb.mxu1 %v3913_v22  ;;  %v3858_v34 = vld [vmem:[#allocation7 + $0x18] sm:$0xf0] }
 0x42a   :  { %2711 = vmatpush.bf16.msra.mxu2 %v3977_v1  ;;  %2724 = vmatpush.bf16.msra.mxu3 %v4041_v28  ;;  %v3861_v22 = vor.u32 %v4385_v42, %v3858_v34  ;;  %v1848_v1 = vperm.slane %v5092_v48, 0  ;;  %v4431_v34 = vld [vmem:[#allocation7 + $0x184] sm:$0xf] }
 0x42d   :  { %2730 = vmatpush.bf16.msra.mxu0 %v3909_v23  ;;  %2743 = vmatpush.bf16.msra.mxu1 %v3973_v13  ;;  %v4425_v23 = vld [vmem:[#allocation7 + $0x154] sm:$0xf] }
 0x42e   :  { %2756 = vmatpush.bf16.msrb.mxu2 %v4037_v60  ;;  %2769 = vmatpush.bf16.msrb.mxu3 %v4101_v10  ;;  %v4021_v19 = vor.u32 %v4425_v23, %v4018_v24  ;;  %v3986_v60 = vld [vmem:[#allocation7 + $0x118] sm:$0xf0] }
 0x42f   :  { %v3989_v63 = vor.u32 %v4417_v37, %v3986_v60  ;;  %v4456_v60 = vld [vmem:[%s5178_s22 + $0x48] sm:$0xff] }
 0x431   :  { %2731 = vmatpush.bf16.msra.mxu0 %v3901_v25  ;;  %2744 = vmatpush.bf16.msra.mxu1 %v3965_v53  ;;  %v4403_v25 = vld [vmem:[#allocation7 + $0xa4] sm:$0xf]  ;;  %v4441_v53 = vld [vmem:[#allocation7 + $0x1d4] sm:$0xf] }
 0x432   :  { %2757 = vmatpush.bf16.msrb.mxu2 %v4029_v12  ;;  %v3933_v13 = vor.u32 %v4403_v25, %v3930_v26  ;;  %2770 = vmatpush.bf16.msrb.mxu3 %v4093_v30  ;;  %v4085_v44 = vor.u32 %v4441_v53, %v4082_v43  ;;  %v3981_v12 = vor.u32 %v4415_v2, %v3978_v3  ;;  %v1850_v25 = vperm.slane %v5092_v48, 2  ;;  %v4454_v48 = vld [vmem:[%s5178_s22 + $0x38] sm:$0xff] }
 0x435   :  { %2732 = vmatpush.bf16.msra.mxu0 %v3893_v38  ;;  %2745 = vmatpush.bf16.msra.mxu1 %v3957_v54  ;;  %v3853_v38 = vor.u32 %v4383_v31, %v3850_v33  ;;  %v4077_v54 = vor.u32 %v4439_v47, %v4074_v11  ;;  %v4451_v47 = vld [vmem:[%s5178_s22 + $0x20] sm:$0xff]  ;;  %v4462_v11 = vld [vmem:[%s5178_s22 + $0x78] sm:$0xff] }
 0x436   :  { %2758 = vmatpush.bf16.msrb.mxu2 %v4021_v19  ;;  %2771 = vmatpush.bf16.msrb.mxu3 %v4085_v44 }
 0x439   :  { %2733 = vmatpush.bf16.msra.mxu0 %v3885_v58  ;;  %2746 = vmatpush.bf16.msra.mxu1 %v3949_v0  ;;  %v4005_v58 = vor.u32 %v4421_v35, %v4002_v46  ;;  %v4058_v0 = vld [vmem:[#allocation7 + $0x1a8] sm:$0xf0] }
 0x43a   :  { %2759 = vmatpush.bf16.msrb.mxu2 %v4013_v40  ;;  %2772 = vmatpush.bf16.msrb.mxu3 %v4077_v54  ;;  %v4061_v4 = vor.u32 %v4435_v61, %v4058_v0  ;;  %v4449_v54 = vld [vmem:[%s5178_s22 + $0x10] sm:$0xff]  ;;  %v2352_v0 = vld [vmem:[%s5177_s21] sm:$0x3] }
 0x43b   :  { %v2354_v2 = vperm.slane %v2352_v0, 0 }
 0x43d   :  { %2734 = vmatpush.bf16.msra.mxu0 %v3877_v39  ;;  %2747 = vmatpush.bf16.msra.mxu1 %v3941_v20  ;;  %v4069_v39 = vor.u32 %v4437_v32, %v4066_v49  ;;  %v4459_v32 = vld [vmem:[%s5178_s22 + $0x60] sm:$0xff] }
 0x43e   :  { %2760 = vmatpush.bf16.msrb.mxu2 %v4005_v58 }
 0x43f   :  { %2773 = vmatpush.bf16.msrb.mxu3 %v4069_v39  ;;  %v4458_v39 = vld [vmem:[%s5178_s22 + $0x58] sm:$0xff] }
 0x441   :  { %2735 = vmatpush.bf16.msra.mxu0 %v3869_v5  ;;  %2748 = vmatpush.bf16.msra.mxu1 %v3933_v13 }
 0x442   :  { %2761 = vmatpush.bf16.msrb.mxu2 %v3997_v57  ;;  %v4447_v57 = vld [vmem:[%s5178_s22] sm:$0xff] }
 0x443   :  { %2774 = vmatpush.bf16.msrb.mxu3 %v4061_v4 }
 0x445   :  { %2736 = vmatpush.bf16.msra.mxu0 %v3861_v22  ;;  %2749 = vmatpush.bf16.msra.mxu1 %v3925_v41  ;;  %v4042_v22 = vld [vmem:[#allocation7 + $0x188] sm:$0xf0] }
 0x446   :  { %2762 = vmatpush.bf16.msrb.mxu2 %v3989_v63  ;;  %v4045_v24 = vor.u32 %v4431_v34, %v4042_v22 }
 0x447   :  { %2775 = vmatpush.bf16.msrb.mxu3 %v4053_v15 }
 0x449   :  { %2737 = vmatpush.bf16.msra.mxu0 %v3853_v38  ;;  %2750 = vmatpush.bf16.msra.mxu1 %v3917_v52  ;;  %v4450_v52 = vld [vmem:[%s5178_s22 + $0x18] sm:$0xff] }
 0x44a   :  { %2763 = vmatpush.bf16.msrb.mxu2 %v3981_v12 }
 0x44b   :  { %2776 = vmatpush.bf16.msrb.mxu3 %v4045_v24 }
 0x488   :  { %v2185_v14 = vpop.f32.mrf.mxu0  ;;  %v2198_v59 = vpop.f32.mrf.mxu1 }
 0x489   :  { %v2186_v62 = vadd.f32 %v2185_v14, %v1848_v1  ;;  %v4460_v1 = vld [vmem:[%s5178_s22 + $0x68] sm:$0xff] }
 0x48b   :  { %v2199_v5 = vadd.f32 %v2198_v59, %v2186_v62  ;;  %v4457_v59 = vld [vmem:[%s5178_s22 + $0x50] sm:$0xff]  ;;  %v4455_v62 = vld [vmem:[%s5178_s22 + $0x40] sm:$0xff] }
 0x48d   :  { %v2280_v28 = vmax.f32 %v2199_v5, 0.0 }
 0x48f   :  { %v2284_v16 = vpack.c.bf16 %v2280_v28, %v2280_v28  ;;  %v2211_v17 = vpop.f32.mrf.mxu2  ;;  %v2224_v20 = vpop.f32.mrf.mxu3 }
 0x490   :  { %v2212_v21 = vadd.f32 %v2211_v17, %v1849_v9  ;;  %v2187_v10 = vpop.f32.mrf.mxu0  ;;  %v2200_v42 = vpop.f32.mrf.mxu1 }
 0x491   :  { %2686 = vmatmul.bf16.vlgmr.msrb.gmra.mxu0 %v2284_v16 }
 0x492   :  { %v2225_v23 = vadd.f32 %v2224_v20, %v2212_v21  ;;  %2918 = vmatpush.bf16.msrb.mxu0 %v4454_v48  ;;  %v2355_v21 = vperm.slane %v2352_v0, 1 }
 0x494   :  { %v2281_v19 = vmax.f32 %v2225_v23, 0.0 }
 0x496   :  { %v2285_v26 = vpack.c.bf16 %v2281_v19, %v2281_v19  ;;  %2919 = vmatpush.bf16.msrb.mxu0 %v4453_v50 }
 0x497   :  { %v2213_v27 = vpop.f32.mrf.mxu2  ;;  %v2226_v13 = vpop.f32.mrf.mxu3 }
 0x498   :  { %2699 = vmatmul.bf16.vlgmr.msrb.gmra.mxu1 %v2285_v26  ;;  %v2237_v29 = vpop.f32.mrf.mxu0  ;;  %v2250_v30 = vpop.f32.mrf.mxu1 }
 0x499   :  { %v2238_v31 = vadd.f32 %v2237_v29, %v1850_v25  ;;  %2931 = vmatpush.bf16.msrb.mxu1 %v4462_v11 }
 0x49a   :  { %2920 = vmatpush.bf16.msrb.mxu0 %v4452_v18  ;;  %v2965_v18 = vpop.permute.xlu0 %2964 }
 0x49b   :  { %v2251_v33 = vadd.f32 %v2250_v30, %v2238_v31  ;;  %v4475_v31 = vld [vmem:[%s5179_s23] ss:$0 sm:$0xff] }
 0x49d   :  { %v2282_v38 = vmax.f32 %v2251_v33, 0.0  ;;  %2932 = vmatpush.bf16.msrb.mxu1 %v4461_v56 }
 0x49e   :  { %2921 = vmatpush.bf16.msrb.mxu0 %v4451_v47 }
 0x49f   :  { %v2286_v7 = vpack.c.bf16 %v2282_v38, %v2282_v38  ;;  %v2263_v40 = vpop.f32.mrf.mxu2  ;;  %v2276_v45 = vpop.f32.mrf.mxu3 }
 0x4a0   :  { %v2264_v51 = vadd.f32 %v2263_v40, %v1851_v36  ;;  %v2239_v41 = vpop.f32.mrf.mxu0  ;;  %v2252_v53 = vpop.f32.mrf.mxu1 }
 0x4a1   :  { %2712 = vmatmul.bf16.vlgmr.msra.gmra.mxu2 %v2286_v7  ;;  %2738 = vmatmul.bf16.vlgmr.msra.gmra.mxu0 %v2284_v16 }
 0x4a2   :  { %v2277_v43 = vadd.f32 %v2276_v45, %v2264_v51  ;;  %2922 = vmatpush.bf16.msrb.mxu0 %v4450_v52  ;;  %2933 = vmatpush.bf16.msrb.mxu1 %v4460_v1 }
 0x4a4   :  { %v2283_v44 = vmax.f32 %v2277_v43, 0.0 }
 0x4a6   :  { %v2287_v35 = vpack.c.bf16 %v2283_v44, %v2283_v44  ;;  %2923 = vmatpush.bf16.msrb.mxu0 %v4449_v54  ;;  %2934 = vmatpush.bf16.msrb.mxu1 %v4459_v32 }
 0x4a7   :  { %v2265_v46 = vpop.f32.mrf.mxu2  ;;  %v2278_v58 = vpop.f32.mrf.mxu3 }
 0x4a8   :  { %2725 = vmatmul.bf16.vlgmr.msra.gmra.mxu3 %v2287_v35  ;;  %2751 = vmatmul.bf16.vlgmr.msra.gmra.mxu1 %v2285_v26 }
 0x4aa   :  { %2924 = vmatpush.bf16.msrb.mxu0 %v4448_v55  ;;  %2935 = vmatpush.bf16.msrb.mxu1 %v4458_v39 }
 0x4ae   :  { %2925 = vmatpush.bf16.msrb.mxu0 %v4447_v57  ;;  %2936 = vmatpush.bf16.msrb.mxu1 %v4457_v59 }
 0x4b1   :  { %2764 = vmatmul.bf16.vlgmr.msrb.gmra.mxu2 %v2286_v7 }
 0x4b2   :  { %2937 = vmatpush.bf16.msrb.mxu1 %v4456_v60 }
 0x4b6   :  { %2938 = vmatpush.bf16.msrb.mxu1 %v4455_v62 }
 0x4b8   :  { %2777 = vmatmul.bf16.vlgmr.msrb.gmra.mxu3 %v2287_v35 }
 0x50e   :  { %v2687_v49 = vpop.f32.mrf.mxu0 }
 0x50f   :  { %v2688_v5 = vadd.f32 %v2687_v49, %v2354_v2 }
 0x515   :  { %v2700_v14 = vpop.f32.mrf.mxu1 }
 0x516   :  { %v2689_v37 = vpop.f32.mrf.mxu0  ;;  %v2701_v8 = vadd.f32 %v2700_v14, %v2688_v5 }
 0x51d   :  { %v2702_v61 = vpop.f32.mrf.mxu1 }
 0x51e   :  { %v2739_v63 = vpop.f32.mrf.mxu0 }
 0x51f   :  { %v2740_v34 = vadd.f32 %v2739_v63, %v2355_v21 }
 0x524   :  { %v2713_v3 = vpop.f32.mrf.mxu2 }
 0x525   :  { %v2752_v4 = vpop.f32.mrf.mxu1  ;;  %v2714_v9 = vadd.f32 %v2713_v3, %v2701_v8 }
 0x526   :  { %v2741_v6 = vpop.f32.mrf.mxu0  ;;  %v2753_v22 = vadd.f32 %v2752_v4, %v2740_v34 }
 0x52b   :  { %v2726_v12 = vpop.f32.mrf.mxu3 }
 0x52c   :  { %v2727_v28 = vadd.f32 %v2726_v12, %v2714_v9  ;;  %v2715_v15 = vpop.f32.mrf.mxu2 }
 0x52d   :  { %v2754_v16 = vpop.f32.mrf.mxu1 }
 0x52e   :  { %v2782_v17 = vmax.f32 %v2727_v28, 0.0 }
 0x530   :  { %v2784_v20 = vpack.c.bf16 %v2782_v17, %v2782_v17 }
 0x532   :  { %2926 = vmatmul.bf16.vlgmr.msrb.gmra.mxu0 %v2784_v20 }
 0x533   :  { %v2728_v10 = vpop.f32.mrf.mxu3 }
 0x534   :  { %v2765_v42 = vpop.f32.mrf.mxu2 }
 0x535   :  { %v2766_v23 = vadd.f32 %v2765_v42, %v2753_v22 }
 0x53b   :  { %v2778_v24 = vpop.f32.mrf.mxu3 }
 0x53c   :  { %v2779_v19 = vadd.f32 %v2778_v24, %v2766_v23  ;;  %v2767_v25 = vpop.f32.mrf.mxu2 }
 0x53e   :  { %v2783_v26 = vmax.f32 %v2779_v19, 0.0 }
 0x540   :  { %v2785_v27 = vpack.c.bf16 %v2783_v26, %v2783_v26 }
 0x542   :  { %2939 = vmatmul.bf16.vlgmr.msrb.gmra.mxu1 %v2785_v27 }
 0x543   :  { %v2780_v13 = vpop.f32.mrf.mxu3 }
 0x5af   :  { %v2927_v29 = vpop.f32.mrf.mxu0 }
 0x5b0   :  { %v2928_v33 = vadd.f32 %v4475_v31, %v2927_v29 }
 0x5b7   :  { %v2929_v30 = vpop.f32.mrf.mxu0 }
 0x5bf   :  { %v2940_v36 = vpop.f32.mrf.mxu1 }
 0x5c0   :  { %v2941_v38 = vadd.f32 %v2940_v36, %v2928_v33 }
 0x5c2   :  { %v4166_v7 = vmul.f32 -1.442695, %v2941_v38 }
 0x5c4   :  { %4496 = vpow2.f32 %v4166_v7 }
 0x5c7   :  { %v2942_v40 = vpop.f32.mrf.mxu1 }
 0x5ca   :  { %v4497_v45 = vpop.eup %4496 }
 0x5cb   :  { %v2947_v51 = vadd.f32 1.0, %v4497_v45 }
 0x5cd   :  { %4498 = vrcp.f32 %v2947_v51  ;;  %v2959_v44 = vand.u32 2147483648, %v2947_v51  ;;  %v2957_v46 = vand.u32 2147483647, %v2947_v51  ;;  %vm2953_vm14 = vweird.f32 %v2947_v51 }
 0x5cf   :  { %v2960_v48 = vor.u32 1.1754944e-38, %v2959_v44  ;;  %vm2958_vm1 = vcmp.eq.f32.partialorder %v2957_v46, 8.507059e+37 }
 0x5d3   :  { %v4499_v41 = vpop.eup %4498 }
 0x5d4   :  { %v2949_v53 = vmul.f32 %v4499_v41, %v2947_v51  ;;  %vm2954_vm13 = vweird.f32 %v4499_v41 }
 0x5d5   :  { %vm2955_vm15 = vmor %vm2953_vm14, %vm2954_vm13 }
 0x5d6   :  { %v2950_v43 = vsub.f32 1.0, %v2949_v53 }
 0x5d8   :  { %v2951_v35 = vmul.f32 %v4499_v41, %v2950_v43 }
 0x5da   :  { %v2952_v58 = vadd.f32 %v4499_v41, %v2951_v35 }
 0x5dc   :  { %v2956_v50 = vsel %vm2955_vm15, %v4499_v41, %v2952_v58 }
 0x5dd   :  { %v2961_v47 = vsel %vm2958_vm1, %v2960_v48, %v2956_v50 }
 0x5de   :  { %v2967_v52 = vsel %vm197_vm0, %v2961_v47, %v2965_v18 }
 0x5df   :  { %2968 = vst [vmem:[%s5201_s24] sm:$0xff] %v2967_v52 }
 0x5e0   :  { %2973 = vsyncpa [#allocation3], 1 }
 0x5e1   :  { %2974 = vsyncpa [#allocation5], 1 }
 0x5e2   :  { %2975 = vsyncpa [#allocation8], 1 }

</bundles_post_ra>
